<compile_context>
chip_gen: v7x
topology: tpu7x:2x2x1
jax: 0.10.0
libtpu: 0.0.40
codegen_flags: <defaults>
</compile_context>

<pallas_src>
import functools
import math

import jax
import jax.numpy as jnp
from jax import lax
from jax.experimental import pallas as pl
from jax.experimental.pallas import tpu as pltpu

EPS = 1e-5  # PyTorch default eps for BatchNorm2d / InstanceNorm2d


def _ceil_to(v, m):
    return ((v + m - 1) // m) * m


# ---------------------------------------------------------------------------
# Kernel 1: implicit-GEMM convolution (NHWC) with K-folded taps, a fused
# per-(sample, channel-tile) statistics epilogue, and an optional fused
# input normalization + ReLU (used to absorb bn1 into conv2's input path).
# ---------------------------------------------------------------------------
def conv_kernel(*refs, stride, kh, kw, oh, ow, pad, n_q, has_norm, phased):
    pos = 0
    x_ref = refs[pos]; pos += 1
    if has_norm:
        mean_ref, rstd_ref, gamma_ref, beta_ref = refs[pos:pos + 4]; pos += 4
    w_ref = refs[pos]; pos += 1
    o_ref, sum_ref, sq_ref = refs[pos:pos + 3]

    cin = x_ref.shape[-1]
    toc = o_ref.shape[-1]

    if phased:
        # x_ref: [1, n_ph, PH, PW, Cin] — spatially padded + phase-split in
        # XLA (stride > 1), so every tap is a unit-stride static window.
        n_ph = x_ref.shape[1]
        phases = [x_ref[0, p].astype(jnp.float32) for p in range(n_ph)]

        def tap(ki, kj):
            p = (ki % stride) * n_q + (kj % stride)
            return phases[p][ki // stride:ki // stride + oh,
                             kj // stride:kj // stride + ow, :]
    else:
        # x_ref: [1, H, W, Cin], stride == 1.  Optional fused bn1-apply
        # (scale/shift precomputed per channel) + ReLU, then the zero halo is
        # built in-VMEM with two concatenates (no XLA pad pass).
        h, wd = x_ref.shape[1], x_ref.shape[2]
        xs = x_ref[0].astype(jnp.float32)
        if has_norm:
            scale = rstd_ref[0] * gamma_ref[...]            # [1, Cin]
            shift = beta_ref[...] - mean_ref[0] * scale
            xs = jnp.maximum(xs * scale + shift, 0.0)       # norm + ReLU
        if pad:
            zr = jnp.zeros((pad, wd, cin), jnp.float32)
            xs = jnp.concatenate([zr, xs, zr], axis=0)
            zc = jnp.zeros((h + 2 * pad, pad, cin), jnp.float32)
            xs = jnp.concatenate([zc, xs, zc], axis=1)

        def tap(ki, kj):
            return xs[ki:ki + oh, kj:kj + ow, :]

    # K-folded implicit GEMM: one [OH*OW, KH*KW*Cin] x [KH*KW*Cin, TOC] matmul.
    taps = [tap(ki, kj) for ki in range(kh) for kj in range(kw)]
    slab = taps[0] if len(taps) == 1 else jnp.concatenate(taps, axis=-1)
    slab = slab.reshape(oh * ow, kh * kw * cin)
    acc = jnp.dot(slab, w_ref[...].astype(jnp.float32),
                  preferred_element_type=jnp.float32)        # [OH*OW, TOC]

    o_ref[0] = acc.reshape(oh, ow, toc).astype(o_ref.dtype)
    # Fused statistics epilogue (per-sample, per-channel-tile sum / sum-sq).
    sum_ref[0] = jnp.sum(acc, axis=0, keepdims=True)
    sq_ref[0] = jnp.sum(acc * acc, axis=0, keepdims=True)


def conv2d_nhwc(x, w, stride, pad, norm=None):
    """NHWC conv.  Returns (y[N,OH,OW,OCP], sums[N,1,OCP], sumsq[N,1,OCP]).

    x: [N, H, W, Cin]; w: [OC, Cin, KH, KW] (PyTorch layout, bias-free).
    OC is zero-padded to OCP (next multiple of 128) for lane-dense MXU output.
    norm = (mean[N,Cin], rstd[N,Cin], gamma[Cin], beta[Cin]) fuses
    (x - mean) * rstd * gamma + beta followed by ReLU into the input path
    (stride must be 1).
    """
    n, h, wd, cin = x.shape
    oc, wcin, kh, kw = w.shape
    assert wcin == cin
    oh = (h + 2 * pad - kh) // stride + 1
    ow = (wd + 2 * pad - kw) // stride + 1

    ocp = _ceil_to(oc, 128)
    toc = 256 if ocp % 256 == 0 else 128   # 256-wide N-dim where divisible
    n_j = ocp // toc

    w_mat = jnp.transpose(w, (2, 3, 1, 0)).reshape(kh * kw * cin, oc)
    if ocp != oc:
        w_mat = jnp.pad(w_mat, ((0, 0), (0, ocp - oc)))
    w_mat = w_mat.astype(x.dtype)

    has_norm = norm is not None
    phased = stride > 1
    assert not (has_norm and phased), "fused input norm requires stride == 1"

    if phased:
        # Pad + phase-split once in XLA so the kernel only sees unit-stride
        # static windows (only used for the stride-2 convs).
        xp = jnp.pad(x, ((0, 0), (pad, pad), (pad, pad), (0, 0))) if pad else x
        n_p, n_q = min(stride, kh), min(stride, kw)
        ph_h = oh + (kh - 1) // stride
        ph_w = ow + (kw - 1) // stride
        phases = []
        for p in range(n_p):
            for q in range(n_q):
                sl = xp[:, p::stride, q::stride, :][:, :ph_h, :ph_w, :]
                dh, dw = ph_h - sl.shape[1], ph_w - sl.shape[2]
                if dh or dw:
                    sl = jnp.pad(sl, ((0, 0), (0, dh), (0, dw), (0, 0)))
                phases.append(sl)
        n_ph = n_p * n_q
        xin = phases[0][:, None] if n_ph == 1 else jnp.stack(phases, axis=1)
        x_block = (1, n_ph, ph_h, ph_w, cin)
        x_map = lambda i, j: (i, 0, 0, 0, 0)
    else:
        n_q = 1
        xin = x
        x_block = (1, h, wd, cin)
        x_map = lambda i, j: (i, 0, 0, 0)

    # Weight-residency heuristic: put the OC-tile axis outer when one weight
    # tile outweighs one activation sample (weights then stay resident across
    # the batch loop instead of being re-DMA'd once per sample).
    x_bytes = math.prod(xin.shape[1:]) * xin.dtype.itemsize
    w_bytes = (kh * kw * cin) * toc * w_mat.dtype.itemsize
    j_outer = w_bytes * n > x_bytes * n_j
    if j_outer:
        grid = (n_j, n)
        def gm(f):
            return lambda j, i, f=f: f(i, j)
    else:
        grid = (n, n_j)
        def gm(f):
            return f

    in_specs = [pl.BlockSpec(x_block, gm(x_map))]
    args = [xin]
    if has_norm:
        mean, rstd, gamma, beta = norm
        args += [mean.reshape(n, 1, cin).astype(jnp.float32),
                 rstd.reshape(n, 1, cin).astype(jnp.float32),
                 gamma.reshape(1, cin).astype(jnp.float32),
                 beta.reshape(1, cin).astype(jnp.float32)]
        samp = gm(lambda i, j: (i, 0, 0))
        bcast = gm(lambda i, j: (0, 0))
        in_specs += [pl.BlockSpec((1, 1, cin), samp),
                     pl.BlockSpec((1, 1, cin), samp),
                     pl.BlockSpec((1, cin), bcast),
                     pl.BlockSpec((1, cin), bcast)]
    args.append(w_mat)
    in_specs.append(pl.BlockSpec((kh * kw * cin, toc), gm(lambda i, j: (0, j))))

    out_shape = (jax.ShapeDtypeStruct((n, oh, ow, ocp), x.dtype),
                 jax.ShapeDtypeStruct((n, 1, ocp), jnp.float32),
                 jax.ShapeDtypeStruct((n, 1, ocp), jnp.float32))
    out_specs = (pl.BlockSpec((1, oh, ow, toc), gm(lambda i, j: (i, 0, 0, j))),
                 pl.BlockSpec((1, 1, toc), gm(lambda i, j: (i, 0, j))),
                 pl.BlockSpec((1, 1, toc), gm(lambda i, j: (i, 0, j))))

    kernel = functools.partial(conv_kernel, stride=stride, kh=kh, kw=kw,
                               oh=oh, ow=ow, pad=pad, n_q=n_q,
                               has_norm=has_norm, phased=phased)
    return pl.pallas_call(
        kernel,
        out_shape=out_shape,
        grid=grid,
        in_specs=in_specs,
        out_specs=out_specs,
        compiler_params=pltpu.CompilerParams(
            dimension_semantics=("parallel", "parallel")),
    )(*args)


# ---------------------------------------------------------------------------
# Tiny XLA-side reductions of the fused conv statistics (per-channel vectors).
# ---------------------------------------------------------------------------
def _batch_stats(sums, sumsq, count):
    s = jnp.sum(sums, axis=0)                      # [1, C]
    q = jnp.sum(sumsq, axis=0)
    mean = s / count
    var = jnp.maximum(q / count - mean * mean, 0.0)
    return mean, lax.rsqrt(var + EPS)


def _instance_stats(sums, sumsq, count):
    mean = sums[:, 0, :] / count                   # [N, C]
    var = jnp.maximum(sumsq[:, 0, :] / count - mean * mean, 0.0)
    return mean, lax.rsqrt(var + EPS)


# ---------------------------------------------------------------------------
# Kernel 2: fused tail — bn2 apply + shortcut-BN apply + residual add +
# optional post-add InstanceNorm (ibn='b') + ReLU, one pass over the output.
# ---------------------------------------------------------------------------
def tail_kernel(*refs, eps, has_sc_bn, has_in):
    x_ref, res_ref, m2_ref, r2_ref, g2_ref, b2_ref = refs[:6]
    pos = 6
    if has_sc_bn:
        ms_ref, rs_ref, gs_ref, bs_ref = refs[pos:pos + 4]; pos += 4
    if has_in:
        ig_ref, ib_ref = refs[pos:pos + 2]; pos += 2
    o_ref = refs[pos]

    x = x_ref[0].astype(jnp.float32)                       # [H, W, C]
    r = res_ref[0].astype(jnp.float32)
    y = (x - m2_ref[...]) * (r2_ref[...] * g2_ref[...]) + b2_ref[...]  # bn2
    if has_sc_bn:                                          # shortcut BN
        r = (r - ms_ref[...]) * (rs_ref[...] * gs_ref[...]) + bs_ref[...]
    y = y + r                                              # residual add
    if has_in:                                             # ibn='b': IN
        inv_cnt = 1.0 / float(y.shape[0] * y.shape[1])
        s = jnp.sum(jnp.sum(y, axis=0, keepdims=True), axis=1, keepdims=True)
        sq = jnp.sum(jnp.sum(y * y, axis=0, keepdims=True), axis=1,
                     keepdims=True)
        m_s = s * inv_cnt
        v_s = jnp.maximum(sq * inv_cnt - m_s * m_s, 0.0)
        y = (y - m_s) * lax.rsqrt(v_s + eps) * ig_ref[...] + ib_ref[...]
    o_ref[0] = jnp.maximum(y, 0.0).astype(o_ref.dtype)     # fused ReLU


def residual_tail(x, res, m2, r2, g2, b2, sc_stats=None, in_affine=None):
    n, h, w, c = x.shape
    has_sc = sc_stats is not None
    has_in = in_affine is not None
    big = pl.BlockSpec((1, h, w, c), lambda i: (i, 0, 0, 0))
    vec = pl.BlockSpec((1, c), lambda i: (0, 0))
    args = [x, res, m2, r2, g2.reshape(1, c), b2.reshape(1, c)]
    specs = [big, big, vec, vec, vec, vec]
    if has_sc:
        ms, rs, gs, bs = sc_stats
        args += [ms, rs, gs.reshape(1, c), bs.reshape(1, c)]
        specs += [vec] * 4
    if has_in:
        ig, ib = in_affine
        args += [ig.reshape(1, c), ib.reshape(1, c)]
        specs += [vec, vec]
    kernel = functools.partial(tail_kernel, eps=EPS,
                               has_sc_bn=has_sc, has_in=has_in)
    return pl.pallas_call(
        kernel,
        out_shape=jax.ShapeDtypeStruct(x.shape, x.dtype),
        grid=(n,),
        in_specs=specs,
        out_specs=big,
        compiler_params=pltpu.CompilerParams(
            dimension_semantics=("parallel",)),
    )(*args)


# ---------------------------------------------------------------------------
# BasicBlock_DuBIN forward (host-facing tensors are NCHW like PyTorch).
# ---------------------------------------------------------------------------
def basic_block_dubin_forward(x_nchw, params, *, stride, ibn):
    x = jnp.transpose(x_nchw, (0, 2, 3, 1))                 # -> NHWC
    n = x.shape[0]
    mid = params["conv1_w"].shape[0]
    outp = params["conv2_w"].shape[0]

    # conv1 (bn1 statistics fused into the conv epilogue — no extra pass)
    out1, s1, q1 = conv2d_nhwc(x, params["conv1_w"], stride, 1)
    _, oh1, ow1, ocp1 = out1.shape

    # bn1 normalization constants.  DuBIN (ibn='a') merges per-sample IN
    # stats on the first `half` channels with batch BN stats on the rest.
    mean_b, rstd_b = _batch_stats(s1, q1, float(n * oh1 * ow1))
    if ibn == "a":
        half = params["bn1_in_gamma"].shape[0]
        mean_i, rstd_i = _instance_stats(s1, q1, float(oh1 * ow1))
        use_in = (jnp.arange(ocp1) < half)[None, :]
        mean1 = jnp.where(use_in, mean_i, mean_b)
        rstd1 = jnp.where(use_in, rstd_i, rstd_b)
        gamma1 = jnp.concatenate([params["bn1_in_gamma"],
                                  params["bn1_bn_gamma"]])
        beta1 = jnp.concatenate([params["bn1_in_beta"],
                                 params["bn1_bn_beta"]])
    else:
        mean1 = jnp.broadcast_to(mean_b, (n, ocp1))
        rstd1 = jnp.broadcast_to(rstd_b, (n, ocp1))
        gamma1, beta1 = params["bn1_bn_gamma"], params["bn1_bn_beta"]
    gamma1 = jnp.pad(gamma1, (0, ocp1 - mid))   # pad channels: gamma=0 -> 0
    beta1 = jnp.pad(beta1, (0, ocp1 - mid))

    # conv2 with bn1-apply + ReLU fused into its input path (mid activation
    # never makes an extra HBM round trip) and bn2 statistics fused.
    w2 = params["conv2_w"]
    if ocp1 != mid:
        w2 = jnp.pad(w2, ((0, 0), (0, ocp1 - mid), (0, 0), (0, 0)))
    out2, s2, q2 = conv2d_nhwc(out1, w2, 1, 1,
                               norm=(mean1, rstd1, gamma1, beta1))
    out2 = out2[..., :outp]
    mean2, rstd2 = _batch_stats(s2[..., :outp], q2[..., :outp],
                                float(n * out2.shape[1] * out2.shape[2]))

    # Shortcut branch (1x1 conv + BN with fused stats) or identity.
    if "shortcut_w" in params:
        sc, ss, qs = conv2d_nhwc(x, params["shortcut_w"], stride, 0)
        sc = sc[..., :outp]
        msc, rsc = _batch_stats(ss[..., :outp], qs[..., :outp],
                                float(n * sc.shape[1] * sc.shape[2]))
        sc_stats = (msc, rsc, params["sc_bn_gamma"], params["sc_bn_beta"])
    else:
        sc = x
        sc_stats = None
    in_affine = ((params["in_b_gamma"], params["in_b_beta"])
                 if ibn == "b" else None)

    # Fused tail: bn2 apply + shortcut BN + add + (IN if ibn=='b') + ReLU.
    y = residual_tail(out2, sc, mean2, rstd2,
                      params["bn2_gamma"], params["bn2_beta"],
                      sc_stats=sc_stats, in_affine=in_affine)
    return jnp.transpose(y, (0, 3, 1, 2))                   # -> NCHW


# ---------------------------------------------------------------------------
# Pure-JAX reference of the same forward (for correctness checking).
# ---------------------------------------------------------------------------
def _ref_conv(x, w, stride, pad):
    return lax.conv_general_dilated(
        x, jnp.transpose(w, (2, 3, 1, 0)), (stride, stride),
        ((pad, pad), (pad, pad)),
        dimension_numbers=("NHWC", "HWIO", "NHWC"),
        precision=lax.Precision.HIGHEST)


def _ref_bn(x, gamma, beta):
    m = jnp.mean(x, axis=(0, 1, 2), keepdims=True)
    v = jnp.var(x, axis=(0, 1, 2), keepdims=True)
    return (x - m) * lax.rsqrt(v + EPS) * gamma + beta


def _ref_in(x, gamma, beta):
    m = jnp.mean(x, axis=(1, 2), keepdims=True)
    v = jnp.var(x, axis=(1, 2), keepdims=True)
    return (x - m) * lax.rsqrt(v + EPS) * gamma + beta


def reference_forward(x_nchw, params, *, stride, ibn):
    x = jnp.transpose(x_nchw, (0, 2, 3, 1))
    out = _ref_conv(x, params["conv1_w"], stride, 1)
    if ibn == "a":
        half = params["bn1_in_gamma"].shape[0]
        o1 = _ref_in(out[..., :half], params["bn1_in_gamma"],
                     params["bn1_in_beta"])
        o2 = _ref_bn(out[..., half:], params["bn1_bn_gamma"],
                     params["bn1_bn_beta"])
        out = jnp.concatenate([o1, o2], axis=-1)
    else:
        out = _ref_bn(out, params["bn1_bn_gamma"], params["bn1_bn_beta"])
    out = jnp.maximum(out, 0.0)
    out = _ref_conv(out, params["conv2_w"], 1, 1)
    out = _ref_bn(out, params["bn2_gamma"], params["bn2_beta"])
    if "shortcut_w" in params:
        sc = _ref_conv(x, params["shortcut_w"], stride, 0)
        sc = _ref_bn(sc, params["sc_bn_gamma"], params["sc_bn_beta"])
    else:
        sc = x
    out = out + sc
    if ibn == "b":
        out = _ref_in(out, params["in_b_gamma"], params["in_b_beta"])
    out = jnp.maximum(out, 0.0)
    return jnp.transpose(out, (0, 3, 1, 2))


# ---------------------------------------------------------------------------
# Deterministic parameter init (matches module __init__ shapes; norm affines
# use PyTorch defaults gamma=1, beta=0).
# ---------------------------------------------------------------------------
def init_params(key, in_planes, mid_planes, out_planes, stride, ibn=None):
    k1, k2, k3 = jax.random.split(key, 3)
    p = {}
    p["conv1_w"] = (jax.random.normal(k1, (mid_planes, in_planes, 3, 3),
                                      jnp.float32)
                    * (1.0 / (in_planes * 9) ** 0.5))
    if ibn == "a":
        half = int(mid_planes * 0.5)
        p["bn1_in_gamma"] = jnp.ones((half,), jnp.float32)
        p["bn1_in_beta"] = jnp.zeros((half,), jnp.float32)
        p["bn1_bn_gamma"] = jnp.ones((mid_planes - half,), jnp.float32)
        p["bn1_bn_beta"] = jnp.zeros((mid_planes - half,), jnp.float32)
    else:
        p["bn1_bn_gamma"] = jnp.ones((mid_planes,), jnp.float32)
        p["bn1_bn_beta"] = jnp.zeros((mid_planes,), jnp.float32)
    p["conv2_w"] = (jax.random.normal(k2, (out_planes, mid_planes, 3, 3),
                                      jnp.float32)
                    * (1.0 / (mid_planes * 9) ** 0.5))
    p["bn2_gamma"] = jnp.ones((out_planes,), jnp.float32)
    p["bn2_beta"] = jnp.zeros((out_planes,), jnp.float32)
    if stride != 1 or in_planes != out_planes:
        p["shortcut_w"] = (jax.random.normal(k3, (out_planes, in_planes, 1, 1),
                                             jnp.float32)
                           * (1.0 / in_planes ** 0.5))
        p["sc_bn_gamma"] = jnp.ones((out_planes,), jnp.float32)
        p["sc_bn_beta"] = jnp.zeros((out_planes,), jnp.float32)
    if ibn == "b":
        p["in_b_gamma"] = jnp.ones((out_planes,), jnp.float32)
        p["in_b_beta"] = jnp.zeros((out_planes,), jnp.float32)
    return p


if __name__ == "__main__":
    key = jax.random.PRNGKey(0)
    kx, kp, kx2, kp2 = jax.random.split(key, 4)

    # Config 1: ibn='a' (DuBIN), stride-2 downsample block with conv shortcut.
    N, in_planes, mid_planes, out_planes = 2, 4, 4, 8
    H = W = 16
    stride, ibn = 2, "a"
    x = jax.random.normal(kx, (N, in_planes, H, W), jnp.float32)
    params = init_params(kp, in_planes, mid_planes, out_planes, stride, ibn)
    fwd = jax.jit(functools.partial(basic_block_dubin_forward,
                                    stride=stride, ibn=ibn))
    y = fwd(x, params)
    jax.block_until_ready(y)
    assert y.shape == (N, out_planes, H // stride, W // stride), y.shape
    assert bool(jnp.all(jnp.isfinite(y)))
    assert bool(jnp.all(y >= 0.0))  # final ReLU
    y_ref = reference_forward(x, params, stride=stride, ibn=ibn)
    assert bool(jnp.allclose(y, y_ref, atol=2e-2, rtol=2e-2)), \
        float(jnp.max(jnp.abs(y - y_ref)))

    # Config 2: ibn='b' (post-residual InstanceNorm), identity shortcut.
    x2 = jax.random.normal(kx2, (N, 8, H, W), jnp.float32)
    params2 = init_params(kp2, 8, 8, 8, 1, "b")
    fwd2 = jax.jit(functools.partial(basic_block_dubin_forward,
                                     stride=1, ibn="b"))
    y2 = fwd2(x2, params2)
    jax.block_until_ready(y2)
    assert y2.shape == (N, 8, H, W), y2.shape
    assert bool(jnp.all(jnp.isfinite(y2)))
    assert bool(jnp.all(y2 >= 0.0))
    y2_ref = reference_forward(x2, params2, stride=1, ibn="b")
    assert bool(jnp.allclose(y2, y2_ref, atol=2e-2, rtol=2e-2)), \
        float(jnp.max(jnp.abs(y2 - y2_ref)))

    print("KERNEL_OK")
</pallas_src>

<mosaic_0001>
module attributes {stable_mosaic.version = 11 : i64} {
  func.func @conv_kernel(%arg0: i32, %arg1: i32, %arg2: memref<1x1x8x8x4xf32, #tpu.memory_space<vmem>>, %arg3: memref<4x128xf32, #tpu.memory_space<vmem>>, %arg4: memref<1x8x8x128xf32, #tpu.memory_space<vmem>>, %arg5: memref<1x1x128xf32, #tpu.memory_space<vmem>>, %arg6: memref<1x1x128xf32, #tpu.memory_space<vmem>>) attributes {dimension_semantics = [#tpu.dimension_semantics<parallel>, #tpu.dimension_semantics<parallel>], iteration_bounds = array<i64: 1, 2>, scalar_prefetch = 0 : i64, scratch_operands = 0 : i64, tpu.core_type = #tpu.core_type<tc>, window_params = [{transform_indices = @transform_0, window_bounds = array<i64: 1, 1, 8, 8, 4>}, {transform_indices = @transform_1, window_bounds = array<i64: 4, 128>}, {transform_indices = @transform_2, window_bounds = array<i64: 1, 8, 8, 128>}, {transform_indices = @transform_3, window_bounds = array<i64: 1, 1, 128>}, {transform_indices = @transform_4, window_bounds = array<i64: 1, 1, 128>}]} {
    %c0 = arith.constant 0 : index
    %c0_0 = arith.constant 0 : index
    %c0_1 = arith.constant 0 : index
    %c0_2 = arith.constant 0 : index
    %c0_3 = arith.constant 0 : index
    %0 = vector.load %arg2[%c0, %c0_0, %c0_1, %c0_2, %c0_3] : memref<1x1x8x8x4xf32, #tpu.memory_space<vmem>>, vector<1x1x8x8x4xf32>
    %1 = vector.shape_cast %0 : vector<1x1x8x8x4xf32> to vector<8x8x4xf32>
    %2 = vector.shape_cast %1 : vector<8x8x4xf32> to vector<64x4xf32>
    %c0_4 = arith.constant 0 : index
    %c0_5 = arith.constant 0 : index
    %3 = vector.load %arg3[%c0_4, %c0_5] : memref<4x128xf32, #tpu.memory_space<vmem>>, vector<4x128xf32>
    %cst = arith.constant dense<0.000000e+00> : vector<64x128xf32>
    %4 = tpu.matmul %2, %3, %cst {dimension_numbers = #tpu.dot_dimension_numbers<[1], [0], [0], [1], [0, 0, 1, 1], [], []>} : vector<64x4xf32>, vector<4x128xf32>, vector<64x128xf32> -> vector<64x128xf32>
    %5 = vector.shape_cast %4 : vector<64x128xf32> to vector<8x8x128xf32>
    %c0_6 = arith.constant 0 : index
    %c0_7 = arith.constant 0 : index
    %c0_8 = arith.constant 0 : index
    %c0_9 = arith.constant 0 : index
    %6 = vector.load %arg4[%c0_6, %c0_7, %c0_8, %c0_9] : memref<1x8x8x128xf32, #tpu.memory_space<vmem>>, vector<1x8x8x128xf32>
    %7 = vector.shape_cast %6 : vector<1x8x8x128xf32> to vector<8x8x128xf32>
    %8 = vector.shape_cast %5 : vector<8x8x128xf32> to vector<1x8x8x128xf32>
    tpu.vector_store %arg4[%c0_6, %c0_7, %c0_8, %c0_9], %8 {strides = array<i32>} : memref<1x8x8x128xf32, #tpu.memory_space<vmem>>, vector<1x8x8x128xf32>,
    %cst_10 = arith.constant dense<0.000000e+00> : vector<128xf32>
    %9 = vector.multi_reduction <add>, %4, %cst_10 [0] : vector<64x128xf32> to vector<128xf32>
    %10 = vector.shape_cast %9 : vector<128xf32> to vector<1x128xf32>
    %c0_11 = arith.constant 0 : index
    %c0_12 = arith.constant 0 : index
    %c0_13 = arith.constant 0 : index
    %11 = vector.load %arg5[%c0_11, %c0_12, %c0_13] : memref<1x1x128xf32, #tpu.memory_space<vmem>>, vector<1x1x128xf32>
    %12 = vector.shape_cast %11 : vector<1x1x128xf32> to vector<1x128xf32>
    %13 = vector.shape_cast %10 : vector<1x128xf32> to vector<1x1x128xf32>
    tpu.vector_store %arg5[%c0_11, %c0_12, %c0_13], %13 {strides = array<i32>} : memref<1x1x128xf32, #tpu.memory_space<vmem>>, vector<1x1x128xf32>,
    %14 = arith.mulf %4, %4 : vector<64x128xf32>
    %cst_14 = arith.constant dense<0.000000e+00> : vector<128xf32>
    %15 = vector.multi_reduction <add>, %14, %cst_14 [0] : vector<64x128xf32> to vector<128xf32>
    %16 = vector.shape_cast %15 : vector<128xf32> to vector<1x128xf32>
    %c0_15 = arith.constant 0 : index
    %c0_16 = arith.constant 0 : index
    %c0_17 = arith.constant 0 : index
    %17 = vector.load %arg6[%c0_15, %c0_16, %c0_17] : memref<1x1x128xf32, #tpu.memory_space<vmem>>, vector<1x1x128xf32>
    %18 = vector.shape_cast %17 : vector<1x1x128xf32> to vector<1x128xf32>
    %19 = vector.shape_cast %16 : vector<1x128xf32> to vector<1x1x128xf32>
    tpu.vector_store %arg6[%c0_15, %c0_16, %c0_17], %19 {strides = array<i32>} : memref<1x1x128xf32, #tpu.memory_space<vmem>>, vector<1x1x128xf32>,
    return
  }
  func.func @transform_0(%arg0: i32, %arg1: i32) -> (i32, i32, i32, i32, i32) {
    %c0_i32 = arith.constant 0 : i32
    %c0_i32_0 = arith.constant 0 : i32
    %c0_i32_1 = arith.constant 0 : i32
    %c0_i32_2 = arith.constant 0 : i32
    %c0_i32_3 = arith.constant 0 : i32
    return %arg1, %c0_i32, %c0_i32_0, %c0_i32_1, %c0_i32_2 : i32, i32, i32, i32, i32
  }
  func.func @transform_1(%arg0: i32, %arg1: i32) -> (i32, i32) {
    %c0_i32 = arith.constant 0 : i32
    %c0_i32_0 = arith.constant 0 : i32
    return %c0_i32, %arg0 : i32, i32
  }
  func.func @transform_2(%arg0: i32, %arg1: i32) -> (i32, i32, i32, i32) {
    %c0_i32 = arith.constant 0 : i32
    %c0_i32_0 = arith.constant 0 : i32
    %c0_i32_1 = arith.constant 0 : i32
    return %arg1, %c0_i32, %c0_i32_0, %arg0 : i32, i32, i32, i32
  }
  func.func @transform_3(%arg0: i32, %arg1: i32) -> (i32, i32, i32) {
    %c0_i32 = arith.constant 0 : i32
    %c0_i32_0 = arith.constant 0 : i32
    return %arg1, %c0_i32, %arg0 : i32, i32, i32
  }
  func.func @transform_4(%arg0: i32, %arg1: i32) -> (i32, i32, i32) {
    %c0_i32 = arith.constant 0 : i32
    %c0_i32_0 = arith.constant 0 : i32
    return %arg1, %c0_i32, %arg0 : i32, i32, i32
  }
}

module attributes {stable_mosaic.version = 11 : i64} {
  func.func @conv_kernel(%arg0: i32, %arg1: i32, %arg2: memref<1x4x9x9x4xf32, #tpu.memory_space<vmem>>, %arg3: memref<36x128xf32, #tpu.memory_space<vmem>>, %arg4: memref<1x8x8x128xf32, #tpu.memory_space<vmem>>, %arg5: memref<1x1x128xf32, #tpu.memory_space<vmem>>, %arg6: memref<1x1x128xf32, #tpu.memory_space<vmem>>) attributes {dimension_semantics = [#tpu.dimension_semantics<parallel>, #tpu.dimension_semantics<parallel>], iteration_bounds = array<i64: 1, 2>, scalar_prefetch = 0 : i64, scratch_operands = 0 : i64, tpu.core_type = #tpu.core_type<tc>, window_params = [{transform_indices = @transform_0, window_bounds = array<i64: 1, 4, 9, 9, 4>}, {transform_indices = @transform_1, window_bounds = array<i64: 36, 128>}, {transform_indices = @transform_2, window_bounds = array<i64: 1, 8, 8, 128>}, {transform_indices = @transform_3, window_bounds = array<i64: 1, 1, 128>}, {transform_indices = @transform_4, window_bounds = array<i64: 1, 1, 128>}]} {
    %c0 = arith.constant 0 : index
    %c0_0 = arith.constant 0 : index
    %c0_1 = arith.constant 0 : index
    %c0_2 = arith.constant 0 : index
    %c0_3 = arith.constant 0 : index
    %0 = vector.load %arg2[%c0, %c0_0, %c0_1, %c0_2, %c0_3] : memref<1x4x9x9x4xf32, #tpu.memory_space<vmem>>, vector<1x1x9x9x4xf32>
    %1 = vector.shape_cast %0 : vector<1x1x9x9x4xf32> to vector<9x9x4xf32>
    %c0_4 = arith.constant 0 : index
    %c1 = arith.constant 1 : index
    %c0_5 = arith.constant 0 : index
    %c0_6 = arith.constant 0 : index
    %c0_7 = arith.constant 0 : index
    %2 = vector.load %arg2[%c0_4, %c1, %c0_5, %c0_6, %c0_7] : memref<1x4x9x9x4xf32, #tpu.memory_space<vmem>>, vector<1x1x9x9x4xf32>
    %3 = vector.shape_cast %2 : vector<1x1x9x9x4xf32> to vector<9x9x4xf32>
    %c0_8 = arith.constant 0 : index
    %c2 = arith.constant 2 : index
    %c0_9 = arith.constant 0 : index
    %c0_10 = arith.constant 0 : index
    %c0_11 = arith.constant 0 : index
    %4 = vector.load %arg2[%c0_8, %c2, %c0_9, %c0_10, %c0_11] : memref<1x4x9x9x4xf32, #tpu.memory_space<vmem>>, vector<1x1x9x9x4xf32>
    %5 = vector.shape_cast %4 : vector<1x1x9x9x4xf32> to vector<9x9x4xf32>
    %c0_12 = arith.constant 0 : index
    %c3 = arith.constant 3 : index
    %c0_13 = arith.constant 0 : index
    %c0_14 = arith.constant 0 : index
    %c0_15 = arith.constant 0 : index
    %6 = vector.load %arg2[%c0_12, %c3, %c0_13, %c0_14, %c0_15] : memref<1x4x9x9x4xf32, #tpu.memory_space<vmem>>, vector<1x1x9x9x4xf32>
    %7 = vector.shape_cast %6 : vector<1x1x9x9x4xf32> to vector<9x9x4xf32>
    %8 = vector.extract_strided_slice %1 {offsets = [0, 0, 0], sizes = [8, 8, 4], strides = [1, 1, 1]} : vector<9x9x4xf32> to vector<8x8x4xf32>
    %9 = vector.extract_strided_slice %3 {offsets = [0, 0, 0], sizes = [8, 8, 4], strides = [1, 1, 1]} : vector<9x9x4xf32> to vector<8x8x4xf32>
    %10 = vector.extract_strided_slice %1 {offsets = [0, 1, 0], sizes = [8, 8, 4], strides = [1, 1, 1]} : vector<9x9x4xf32> to vector<8x8x4xf32>
    %11 = vector.extract_strided_slice %5 {offsets = [0, 0, 0], sizes = [8, 8, 4], strides = [1, 1, 1]} : vector<9x9x4xf32> to vector<8x8x4xf32>
    %12 = vector.extract_strided_slice %7 {offsets = [0, 0, 0], sizes = [8, 8, 4], strides = [1, 1, 1]} : vector<9x9x4xf32> to vector<8x8x4xf32>
    %13 = vector.extract_strided_slice %5 {offsets = [0, 1, 0], sizes = [8, 8, 4], strides = [1, 1, 1]} : vector<9x9x4xf32> to vector<8x8x4xf32>
    %14 = vector.extract_strided_slice %1 {offsets = [1, 0, 0], sizes = [8, 8, 4], strides = [1, 1, 1]} : vector<9x9x4xf32> to vector<8x8x4xf32>
    %15 = vector.extract_strided_slice %3 {offsets = [1, 0, 0], sizes = [8, 8, 4], strides = [1, 1, 1]} : vector<9x9x4xf32> to vector<8x8x4xf32>
    %16 = vector.extract_strided_slice %1 {offsets = [1, 1, 0], sizes = [8, 8, 4], strides = [1, 1, 1]} : vector<9x9x4xf32> to vector<8x8x4xf32>
    %17 = tpu.concatenate %8, %9, %10, %11, %12, %13, %14, %15, %16 in 2 : vector<8x8x4xf32>, vector<8x8x4xf32>, vector<8x8x4xf32>, vector<8x8x4xf32>, vector<8x8x4xf32>, vector<8x8x4xf32>, vector<8x8x4xf32>, vector<8x8x4xf32>, vector<8x8x4xf32> -> vector<8x8x36xf32>
    %18 = vector.shape_cast %17 : vector<8x8x36xf32> to vector<64x36xf32>
    %c0_16 = arith.constant 0 : index
    %c0_17 = arith.constant 0 : index
    %19 = vector.load %arg3[%c0_16, %c0_17] : memref<36x128xf32, #tpu.memory_space<vmem>>, vector<36x128xf32>
    %cst = arith.constant dense<0.000000e+00> : vector<64x128xf32>
    %20 = tpu.matmul %18, %19, %cst {dimension_numbers = #tpu.dot_dimension_numbers<[1], [0], [0], [1], [0, 0, 1, 1], [], []>} : vector<64x36xf32>, vector<36x128xf32>, vector<64x128xf32> -> vector<64x128xf32>
    %21 = vector.shape_cast %20 : vector<64x128xf32> to vector<8x8x128xf32>
    %c0_18 = arith.constant 0 : index
    %c0_19 = arith.constant 0 : index
    %c0_20 = arith.constant 0 : index
    %c0_21 = arith.constant 0 : index
    %22 = vector.load %arg4[%c0_18, %c0_19, %c0_20, %c0_21] : memref<1x8x8x128xf32, #tpu.memory_space<vmem>>, vector<1x8x8x128xf32>
    %23 = vector.shape_cast %22 : vector<1x8x8x128xf32> to vector<8x8x128xf32>
    %24 = vector.shape_cast %21 : vector<8x8x128xf32> to vector<1x8x8x128xf32>
    tpu.vector_store %arg4[%c0_18, %c0_19, %c0_20, %c0_21], %24 {strides = array<i32>} : memref<1x8x8x128xf32, #tpu.memory_space<vmem>>, vector<1x8x8x128xf32>,
    %cst_22 = arith.constant dense<0.000000e+00> : vector<128xf32>
    %25 = vector.multi_reduction <add>, %20, %cst_22 [0] : vector<64x128xf32> to vector<128xf32>
    %26 = vector.shape_cast %25 : vector<128xf32> to vector<1x128xf32>
    %c0_23 = arith.constant 0 : index
    %c0_24 = arith.constant 0 : index
    %c0_25 = arith.constant 0 : index
    %27 = vector.load %arg5[%c0_23, %c0_24, %c0_25] : memref<1x1x128xf32, #tpu.memory_space<vmem>>, vector<1x1x128xf32>
    %28 = vector.shape_cast %27 : vector<1x1x128xf32> to vector<1x128xf32>
    %29 = vector.shape_cast %26 : vector<1x128xf32> to vector<1x1x128xf32>
    tpu.vector_store %arg5[%c0_23, %c0_24, %c0_25], %29 {strides = array<i32>} : memref<1x1x128xf32, #tpu.memory_space<vmem>>, vector<1x1x128xf32>,
    %30 = arith.mulf %20, %20 : vector<64x128xf32>
    %cst_26 = arith.constant dense<0.000000e+00> : vector<128xf32>
    %31 = vector.multi_reduction <add>, %30, %cst_26 [0] : vector<64x128xf32> to vector<128xf32>
    %32 = vector.shape_cast %31 : vector<128xf32> to vector<1x128xf32>
    %c0_27 = arith.constant 0 : index
    %c0_28 = arith.constant 0 : index
    %c0_29 = arith.constant 0 : index
    %33 = vector.load %arg6[%c0_27, %c0_28, %c0_29] : memref<1x1x128xf32, #tpu.memory_space<vmem>>, vector<1x1x128xf32>
    %34 = vector.shape_cast %33 : vector<1x1x128xf32> to vector<1x128xf32>
    %35 = vector.shape_cast %32 : vector<1x128xf32> to vector<1x1x128xf32>
    tpu.vector_store %arg6[%c0_27, %c0_28, %c0_29], %35 {strides = array<i32>} : memref<1x1x128xf32, #tpu.memory_space<vmem>>, vector<1x1x128xf32>,
    return
  }
  func.func @transform_0(%arg0: i32, %arg1: i32) -> (i32, i32, i32, i32, i32) {
    %c0_i32 = arith.constant 0 : i32
    %c0_i32_0 = arith.constant 0 : i32
    %c0_i32_1 = arith.constant 0 : i32
    %c0_i32_2 = arith.constant 0 : i32
    %c0_i32_3 = arith.constant 0 : i32
    return %arg1, %c0_i32, %c0_i32_0, %c0_i32_1, %c0_i32_2 : i32, i32, i32, i32, i32
  }
  func.func @transform_1(%arg0: i32, %arg1: i32) -> (i32, i32) {
    %c0_i32 = arith.constant 0 : i32
    %c0_i32_0 = arith.constant 0 : i32
    return %c0_i32, %arg0 : i32, i32
  }
  func.func @transform_2(%arg0: i32, %arg1: i32) -> (i32, i32, i32, i32) {
    %c0_i32 = arith.constant 0 : i32
    %c0_i32_0 = arith.constant 0 : i32
    %c0_i32_1 = arith.constant 0 : i32
    return %arg1, %c0_i32, %c0_i32_0, %arg0 : i32, i32, i32, i32
  }
  func.func @transform_3(%arg0: i32, %arg1: i32) -> (i32, i32, i32) {
    %c0_i32 = arith.constant 0 : i32
    %c0_i32_0 = arith.constant 0 : i32
    return %arg1, %c0_i32, %arg0 : i32, i32, i32
  }
  func.func @transform_4(%arg0: i32, %arg1: i32) -> (i32, i32, i32) {
    %c0_i32 = arith.constant 0 : i32
    %c0_i32_0 = arith.constant 0 : i32
    return %arg1, %c0_i32, %arg0 : i32, i32, i32
  }
}

module attributes {stable_mosaic.version = 11 : i64} {
  func.func @tail_kernel(%arg0: i32, %arg1: memref<1x8x8x8xf32, #tpu.memory_space<vmem>>, %arg2: memref<1x8x8x8xf32, #tpu.memory_space<vmem>>, %arg3: memref<1x8xf32, #tpu.memory_space<vmem>>, %arg4: memref<1x8xf32, #tpu.memory_space<vmem>>, %arg5: memref<1x8xf32, #tpu.memory_space<vmem>>, %arg6: memref<1x8xf32, #tpu.memory_space<vmem>>, %arg7: memref<1x8xf32, #tpu.memory_space<vmem>>, %arg8: memref<1x8xf32, #tpu.memory_space<vmem>>, %arg9: memref<1x8xf32, #tpu.memory_space<vmem>>, %arg10: memref<1x8xf32, #tpu.memory_space<vmem>>, %arg11: memref<1x8x8x8xf32, #tpu.memory_space<vmem>>) attributes {dimension_semantics = [#tpu.dimension_semantics<parallel>], iteration_bounds = array<i64: 2>, scalar_prefetch = 0 : i64, scratch_operands = 0 : i64, tpu.core_type = #tpu.core_type<tc>, window_params = [{transform_indices = @transform_0, window_bounds = array<i64: 1, 8, 8, 8>}, {transform_indices = @transform_1, window_bounds = array<i64: 1, 8, 8, 8>}, {pipeline_mode = #tpu.pipeline_mode<synchronous>, transform_indices = @transform_2, window_bounds = array<i64: 1, 8>}, {pipeline_mode = #tpu.pipeline_mode<synchronous>, transform_indices = @transform_3, window_bounds = array<i64: 1, 8>}, {pipeline_mode = #tpu.pipeline_mode<synchronous>, transform_indices = @transform_4, window_bounds = array<i64: 1, 8>}, {pipeline_mode = #tpu.pipeline_mode<synchronous>, transform_indices = @transform_5, window_bounds = array<i64: 1, 8>}, {pipeline_mode = #tpu.pipeline_mode<synchronous>, transform_indices = @transform_6, window_bounds = array<i64: 1, 8>}, {pipeline_mode = #tpu.pipeline_mode<synchronous>, transform_indices = @transform_7, window_bounds = array<i64: 1, 8>}, {pipeline_mode = #tpu.pipeline_mode<synchronous>, transform_indices = @transform_8, window_bounds = array<i64: 1, 8>}, {pipeline_mode = #tpu.pipeline_mode<synchronous>, transform_indices = @transform_9, window_bounds = array<i64: 1, 8>}, {transform_indices = @transform_10, window_bounds = array<i64: 1, 8, 8, 8>}]} {
    %c0 = arith.constant 0 : index
    %c0_0 = arith.constant 0 : index
    %c0_1 = arith.constant 0 : index
    %c0_2 = arith.constant 0 : index
    %0 = vector.load %arg1[%c0, %c0_0, %c0_1, %c0_2] : memref<1x8x8x8xf32, #tpu.memory_space<vmem>>, vector<1x8x8x8xf32>
    %1 = vector.shape_cast %0 : vector<1x8x8x8xf32> to vector<8x8x8xf32>
    %c0_3 = arith.constant 0 : index
    %c0_4 = arith.constant 0 : index
    %c0_5 = arith.constant 0 : index
    %c0_6 = arith.constant 0 : index
    %2 = vector.load %arg2[%c0_3, %c0_4, %c0_5, %c0_6] : memref<1x8x8x8xf32, #tpu.memory_space<vmem>>, vector<1x8x8x8xf32>
    %3 = vector.shape_cast %2 : vector<1x8x8x8xf32> to vector<8x8x8xf32>
    %c0_7 = arith.constant 0 : index
    %c0_8 = arith.constant 0 : index
    %4 = vector.load %arg3[%c0_7, %c0_8] : memref<1x8xf32, #tpu.memory_space<vmem>>, vector<1x8xf32>
    %5 = vector.shape_cast %4 : vector<1x8xf32> to vector<1x1x8xf32>
    %6 = vector.broadcast %5 : vector<1x1x8xf32> to vector<8x8x8xf32>
    %7 = arith.subf %1, %6 : vector<8x8x8xf32>
    %c0_9 = arith.constant 0 : index
    %c0_10 = arith.constant 0 : index
    %8 = vector.load %arg4[%c0_9, %c0_10] : memref<1x8xf32, #tpu.memory_space<vmem>>, vector<1x8xf32>
    %c0_11 = arith.constant 0 : index
    %c0_12 = arith.constant 0 : index
    %9 = vector.load %arg5[%c0_11, %c0_12] : memref<1x8xf32, #tpu.memory_space<vmem>>, vector<1x8xf32>
    %10 = arith.mulf %8, %9 : vector<1x8xf32>
    %11 = vector.shape_cast %10 : vector<1x8xf32> to vector<1x1x8xf32>
    %12 = vector.broadcast %11 : vector<1x1x8xf32> to vector<8x8x8xf32>
    %13 = arith.mulf %7, %12 : vector<8x8x8xf32>
    %c0_13 = arith.constant 0 : index
    %c0_14 = arith.constant 0 : index
    %14 = vector.load %arg6[%c0_13, %c0_14] : memref<1x8xf32, #tpu.memory_space<vmem>>, vector<1x8xf32>
    %15 = vector.shape_cast %14 : vector<1x8xf32> to vector<1x1x8xf32>
    %16 = vector.broadcast %15 : vector<1x1x8xf32> to vector<8x8x8xf32>
    %17 = arith.addf %13, %16 : vector<8x8x8xf32>
    %c0_15 = arith.constant 0 : index
    %c0_16 = arith.constant 0 : index
    %18 = vector.load %arg7[%c0_15, %c0_16] : memref<1x8xf32, #tpu.memory_space<vmem>>, vector<1x8xf32>
    %19 = vector.shape_cast %18 : vector<1x8xf32> to vector<1x1x8xf32>
    %20 = vector.broadcast %19 : vector<1x1x8xf32> to vector<8x8x8xf32>
    %21 = arith.subf %3, %20 : vector<8x8x8xf32>
    %c0_17 = arith.constant 0 : index
    %c0_18 = arith.constant 0 : index
    %22 = vector.load %arg8[%c0_17, %c0_18] : memref<1x8xf32, #tpu.memory_space<vmem>>, vector<1x8xf32>
    %c0_19 = arith.constant 0 : index
    %c0_20 = arith.constant 0 : index
    %23 = vector.load %arg9[%c0_19, %c0_20] : memref<1x8xf32, #tpu.memory_space<vmem>>, vector<1x8xf32>
    %24 = arith.mulf %22, %23 : vector<1x8xf32>
    %25 = vector.shape_cast %24 : vector<1x8xf32> to vector<1x1x8xf32>
    %26 = vector.broadcast %25 : vector<1x1x8xf32> to vector<8x8x8xf32>
    %27 = arith.mulf %21, %26 : vector<8x8x8xf32>
    %c0_21 = arith.constant 0 : index
    %c0_22 = arith.constant 0 : index
    %28 = vector.load %arg10[%c0_21, %c0_22] : memref<1x8xf32, #tpu.memory_space<vmem>>, vector<1x8xf32>
    %29 = vector.shape_cast %28 : vector<1x8xf32> to vector<1x1x8xf32>
    %30 = vector.broadcast %29 : vector<1x1x8xf32> to vector<8x8x8xf32>
    %31 = arith.addf %27, %30 : vector<8x8x8xf32>
    %32 = arith.addf %17, %31 : vector<8x8x8xf32>
    %cst = arith.constant 0.000000e+00 : f32
    %33 = vector.broadcast %cst : f32 to vector<8x8x8xf32>
    %34 = arith.maximumf %32, %33 : vector<8x8x8xf32>
    %c0_23 = arith.constant 0 : index
    %c0_24 = arith.constant 0 : index
    %c0_25 = arith.constant 0 : index
    %c0_26 = arith.constant 0 : index
    %35 = vector.load %arg11[%c0_23, %c0_24, %c0_25, %c0_26] : memref<1x8x8x8xf32, #tpu.memory_space<vmem>>, vector<1x8x8x8xf32>
    %36 = vector.shape_cast %35 : vector<1x8x8x8xf32> to vector<8x8x8xf32>
    %37 = vector.shape_cast %34 : vector<8x8x8xf32> to vector<1x8x8x8xf32>
    tpu.vector_store %arg11[%c0_23, %c0_24, %c0_25, %c0_26], %37 {strides = array<i32>} : memref<1x8x8x8xf32, #tpu.memory_space<vmem>>, vector<1x8x8x8xf32>,
    return
  }
  func.func @transform_0(%arg0: i32) -> (i32, i32, i32, i32) {
    %c0_i32 = arith.constant 0 : i32
    %c0_i32_0 = arith.constant 0 : i32
    %c0_i32_1 = arith.constant 0 : i32
    %c0_i32_2 = arith.constant 0 : i32
    return %arg0, %c0_i32, %c0_i32_0, %c0_i32_1 : i32, i32, i32, i32
  }
  func.func @transform_1(%arg0: i32) -> (i32, i32, i32, i32) {
    %c0_i32 = arith.constant 0 : i32
    %c0_i32_0 = arith.constant 0 : i32
    %c0_i32_1 = arith.constant 0 : i32
    %c0_i32_2 = arith.constant 0 : i32
    return %arg0, %c0_i32, %c0_i32_0, %c0_i32_1 : i32, i32, i32, i32
  }
  func.func @transform_2(%arg0: i32) -> (i32, i32) {
    %c0_i32 = arith.constant 0 : i32
    %c0_i32_0 = arith.constant 0 : i32
    %c0_i32_1 = arith.constant 0 : i32
    return %c0_i32, %c0_i32_0 : i32, i32
  }
  func.func @transform_3(%arg0: i32) -> (i32, i32) {
    %c0_i32 = arith.constant 0 : i32
    %c0_i32_0 = arith.constant 0 : i32
    %c0_i32_1 = arith.constant 0 : i32
    return %c0_i32, %c0_i32_0 : i32, i32
  }
  func.func @transform_4(%arg0: i32) -> (i32, i32) {
    %c0_i32 = arith.constant 0 : i32
    %c0_i32_0 = arith.constant 0 : i32
    %c0_i32_1 = arith.constant 0 : i32
    return %c0_i32, %c0_i32_0 : i32, i32
  }
  func.func @transform_5(%arg0: i32) -> (i32, i32) {
    %c0_i32 = arith.constant 0 : i32
    %c0_i32_0 = arith.constant 0 : i32
    %c0_i32_1 = arith.constant 0 : i32
    return %c0_i32, %c0_i32_0 : i32, i32
  }
  func.func @transform_6(%arg0: i32) -> (i32, i32) {
    %c0_i32 = arith.constant 0 : i32
    %c0_i32_0 = arith.constant 0 : i32
    %c0_i32_1 = arith.constant 0 : i32
    return %c0_i32, %c0_i32_0 : i32, i32
  }
  func.func @transform_7(%arg0: i32) -> (i32, i32) {
    %c0_i32 = arith.constant 0 : i32
    %c0_i32_0 = arith.constant 0 : i32
    %c0_i32_1 = arith.constant 0 : i32
    return %c0_i32, %c0_i32_0 : i32, i32
  }
  func.func @transform_8(%arg0: i32) -> (i32, i32) {
    %c0_i32 = arith.constant 0 : i32
    %c0_i32_0 = arith.constant 0 : i32
    %c0_i32_1 = arith.constant 0 : i32
    return %c0_i32, %c0_i32_0 : i32, i32
  }
  func.func @transform_9(%arg0: i32) -> (i32, i32) {
    %c0_i32 = arith.constant 0 : i32
    %c0_i32_0 = arith.constant 0 : i32
    %c0_i32_1 = arith.constant 0 : i32
    return %c0_i32, %c0_i32_0 : i32, i32
  }
  func.func @transform_10(%arg0: i32) -> (i32, i32, i32, i32) {
    %c0_i32 = arith.constant 0 : i32
    %c0_i32_0 = arith.constant 0 : i32
    %c0_i32_1 = arith.constant 0 : i32
    %c0_i32_2 = arith.constant 0 : i32
    return %arg0, %c0_i32, %c0_i32_0, %c0_i32_1 : i32, i32, i32, i32
  }
}

module attributes {stable_mosaic.version = 11 : i64} {
  func.func @conv_kernel(%arg0: i32, %arg1: i32, %arg2: memref<1x8x8x128xf32, #tpu.memory_space<vmem>>, %arg3: memref<1x1x128xf32, #tpu.memory_space<vmem>>, %arg4: memref<1x1x128xf32, #tpu.memory_space<vmem>>, %arg5: memref<1x128xf32, #tpu.memory_space<vmem>>, %arg6: memref<1x128xf32, #tpu.memory_space<vmem>>, %arg7: memref<1152x128xf32, #tpu.memory_space<vmem>>, %arg8: memref<1x8x8x128xf32, #tpu.memory_space<vmem>>, %arg9: memref<1x1x128xf32, #tpu.memory_space<vmem>>, %arg10: memref<1x1x128xf32, #tpu.memory_space<vmem>>) attributes {dimension_semantics = [#tpu.dimension_semantics<parallel>, #tpu.dimension_semantics<parallel>], iteration_bounds = array<i64: 1, 2>, scalar_prefetch = 0 : i64, scratch_operands = 0 : i64, tpu.core_type = #tpu.core_type<tc>, window_params = [{transform_indices = @transform_0, window_bounds = array<i64: 1, 8, 8, 128>}, {transform_indices = @transform_1, window_bounds = array<i64: 1, 1, 128>}, {transform_indices = @transform_2, window_bounds = array<i64: 1, 1, 128>}, {pipeline_mode = #tpu.pipeline_mode<synchronous>, transform_indices = @transform_3, window_bounds = array<i64: 1, 128>}, {pipeline_mode = #tpu.pipeline_mode<synchronous>, transform_indices = @transform_4, window_bounds = array<i64: 1, 128>}, {transform_indices = @transform_5, window_bounds = array<i64: 1152, 128>}, {transform_indices = @transform_6, window_bounds = array<i64: 1, 8, 8, 128>}, {transform_indices = @transform_7, window_bounds = array<i64: 1, 1, 128>}, {transform_indices = @transform_8, window_bounds = array<i64: 1, 1, 128>}]} {
    %c0 = arith.constant 0 : index
    %c0_0 = arith.constant 0 : index
    %c0_1 = arith.constant 0 : index
    %c0_2 = arith.constant 0 : index
    %0 = vector.load %arg2[%c0, %c0_0, %c0_1, %c0_2] : memref<1x8x8x128xf32, #tpu.memory_space<vmem>>, vector<1x8x8x128xf32>
    %1 = vector.shape_cast %0 : vector<1x8x8x128xf32> to vector<8x8x128xf32>
    %c0_3 = arith.constant 0 : index
    %c0_4 = arith.constant 0 : index
    %c0_5 = arith.constant 0 : index
    %2 = vector.load %arg4[%c0_3, %c0_4, %c0_5] : memref<1x1x128xf32, #tpu.memory_space<vmem>>, vector<1x1x128xf32>
    %3 = vector.shape_cast %2 : vector<1x1x128xf32> to vector<1x128xf32>
    %c0_6 = arith.constant 0 : index
    %c0_7 = arith.constant 0 : index
    %4 = vector.load %arg5[%c0_6, %c0_7] : memref<1x128xf32, #tpu.memory_space<vmem>>, vector<1x128xf32>
    %5 = arith.mulf %3, %4 : vector<1x128xf32>
    %c0_8 = arith.constant 0 : index
    %c0_9 = arith.constant 0 : index
    %6 = vector.load %arg6[%c0_8, %c0_9] : memref<1x128xf32, #tpu.memory_space<vmem>>, vector<1x128xf32>
    %c0_10 = arith.constant 0 : index
    %c0_11 = arith.constant 0 : index
    %c0_12 = arith.constant 0 : index
    %7 = vector.load %arg3[%c0_10, %c0_11, %c0_12] : memref<1x1x128xf32, #tpu.memory_space<vmem>>, vector<1x1x128xf32>
    %8 = vector.shape_cast %7 : vector<1x1x128xf32> to vector<1x128xf32>
    %9 = arith.mulf %8, %5 : vector<1x128xf32>
    %10 = arith.subf %6, %9 : vector<1x128xf32>
    %11 = vector.shape_cast %5 : vector<1x128xf32> to vector<1x1x128xf32>
    %12 = vector.broadcast %11 : vector<1x1x128xf32> to vector<8x8x128xf32>
    %13 = arith.mulf %1, %12 : vector<8x8x128xf32>
    %14 = vector.shape_cast %10 : vector<1x128xf32> to vector<1x1x128xf32>
    %15 = vector.broadcast %14 : vector<1x1x128xf32> to vector<8x8x128xf32>
    %16 = arith.addf %13, %15 : vector<8x8x128xf32>
    %cst = arith.constant 0.000000e+00 : f32
    %17 = vector.broadcast %cst : f32 to vector<8x8x128xf32>
    %18 = arith.maximumf %16, %17 : vector<8x8x128xf32>
    %cst_13 = arith.constant 0.000000e+00 : f32
    %19 = vector.broadcast %cst_13 : f32 to vector<1x8x128xf32>
    %20 = tpu.concatenate %19, %18, %19 in 0 : vector<1x8x128xf32>, vector<8x8x128xf32>, vector<1x8x128xf32> -> vector<10x8x128xf32>
    %cst_14 = arith.constant 0.000000e+00 : f32
    %21 = vector.broadcast %cst_14 : f32 to vector<10x1x128xf32>
    %22 = tpu.concatenate %21, %20, %21 in 1 : vector<10x1x128xf32>, vector<10x8x128xf32>, vector<10x1x128xf32> -> vector<10x10x128xf32>
    %23 = vector.extract_strided_slice %22 {offsets = [0, 0, 0], sizes = [8, 8, 128], strides = [1, 1, 1]} : vector<10x10x128xf32> to vector<8x8x128xf32>
    %24 = vector.extract_strided_slice %22 {offsets = [0, 1, 0], sizes = [8, 8, 128], strides = [1, 1, 1]} : vector<10x10x128xf32> to vector<8x8x128xf32>
    %25 = vector.extract_strided_slice %22 {offsets = [0, 2, 0], sizes = [8, 8, 128], strides = [1, 1, 1]} : vector<10x10x128xf32> to vector<8x8x128xf32>
    %26 = vector.extract_strided_slice %22 {offsets = [1, 0, 0], sizes = [8, 8, 128], strides = [1, 1, 1]} : vector<10x10x128xf32> to vector<8x8x128xf32>
    %27 = vector.extract_strided_slice %22 {offsets = [1, 1, 0], sizes = [8, 8, 128], strides = [1, 1, 1]} : vector<10x10x128xf32> to vector<8x8x128xf32>
    %28 = vector.extract_strided_slice %22 {offsets = [1, 2, 0], sizes = [8, 8, 128], strides = [1, 1, 1]} : vector<10x10x128xf32> to vector<8x8x128xf32>
    %29 = vector.extract_strided_slice %22 {offsets = [2, 0, 0], sizes = [8, 8, 128], strides = [1, 1, 1]} : vector<10x10x128xf32> to vector<8x8x128xf32>
    %30 = vector.extract_strided_slice %22 {offsets = [2, 1, 0], sizes = [8, 8, 128], strides = [1, 1, 1]} : vector<10x10x128xf32> to vector<8x8x128xf32>
    %31 = vector.extract_strided_slice %22 {offsets = [2, 2, 0], sizes = [8, 8, 128], strides = [1, 1, 1]} : vector<10x10x128xf32> to vector<8x8x128xf32>
    %32 = tpu.concatenate %23, %24, %25, %26, %27, %28, %29, %30, %31 in 2 : vector<8x8x128xf32>, vector<8x8x128xf32>, vector<8x8x128xf32>, vector<8x8x128xf32>, vector<8x8x128xf32>, vector<8x8x128xf32>, vector<8x8x128xf32>, vector<8x8x128xf32>, vector<8x8x128xf32> -> vector<8x8x1152xf32>
    %33 = vector.shape_cast %32 : vector<8x8x1152xf32> to vector<64x1152xf32>
    %c0_15 = arith.constant 0 : index
    %c0_16 = arith.constant 0 : index
    %34 = vector.load %arg7[%c0_15, %c0_16] : memref<1152x128xf32, #tpu.memory_space<vmem>>, vector<1152x128xf32>
    %cst_17 = arith.constant dense<0.000000e+00> : vector<64x128xf32>
    %35 = tpu.matmul %33, %34, %cst_17 {dimension_numbers = #tpu.dot_dimension_numbers<[1], [0], [0], [1], [0, 0, 1, 1], [], []>} : vector<64x1152xf32>, vector<1152x128xf32>, vector<64x128xf32> -> vector<64x128xf32>
    %36 = vector.shape_cast %35 : vector<64x128xf32> to vector<8x8x128xf32>
    %c0_18 = arith.constant 0 : index
    %c0_19 = arith.constant 0 : index
    %c0_20 = arith.constant 0 : index
    %c0_21 = arith.constant 0 : index
    %37 = vector.load %arg8[%c0_18, %c0_19, %c0_20, %c0_21] : memref<1x8x8x128xf32, #tpu.memory_space<vmem>>, vector<1x8x8x128xf32>
    %38 = vector.shape_cast %37 : vector<1x8x8x128xf32> to vector<8x8x128xf32>
    %39 = vector.shape_cast %36 : vector<8x8x128xf32> to vector<1x8x8x128xf32>
    tpu.vector_store %arg8[%c0_18, %c0_19, %c0_20, %c0_21], %39 {strides = array<i32>} : memref<1x8x8x128xf32, #tpu.memory_space<vmem>>, vector<1x8x8x128xf32>,
    %cst_22 = arith.constant dense<0.000000e+00> : vector<128xf32>
    %40 = vector.multi_reduction <add>, %35, %cst_22 [0] : vector<64x128xf32> to vector<128xf32>
    %41 = vector.shape_cast %40 : vector<128xf32> to vector<1x128xf32>
    %c0_23 = arith.constant 0 : index
    %c0_24 = arith.constant 0 : index
    %c0_25 = arith.constant 0 : index
    %42 = vector.load %arg9[%c0_23, %c0_24, %c0_25] : memref<1x1x128xf32, #tpu.memory_space<vmem>>, vector<1x1x128xf32>
    %43 = vector.shape_cast %42 : vector<1x1x128xf32> to vector<1x128xf32>
    %44 = vector.shape_cast %41 : vector<1x128xf32> to vector<1x1x128xf32>
    tpu.vector_store %arg9[%c0_23, %c0_24, %c0_25], %44 {strides = array<i32>} : memref<1x1x128xf32, #tpu.memory_space<vmem>>, vector<1x1x128xf32>,
    %45 = arith.mulf %35, %35 : vector<64x128xf32>
    %cst_26 = arith.constant dense<0.000000e+00> : vector<128xf32>
    %46 = vector.multi_reduction <add>, %45, %cst_26 [0] : vector<64x128xf32> to vector<128xf32>
    %47 = vector.shape_cast %46 : vector<128xf32> to vector<1x128xf32>
    %c0_27 = arith.constant 0 : index
    %c0_28 = arith.constant 0 : index
    %c0_29 = arith.constant 0 : index
    %48 = vector.load %arg10[%c0_27, %c0_28, %c0_29] : memref<1x1x128xf32, #tpu.memory_space<vmem>>, vector<1x1x128xf32>
    %49 = vector.shape_cast %48 : vector<1x1x128xf32> to vector<1x128xf32>
    %50 = vector.shape_cast %47 : vector<1x128xf32> to vector<1x1x128xf32>
    tpu.vector_store %arg10[%c0_27, %c0_28, %c0_29], %50 {strides = array<i32>} : memref<1x1x128xf32, #tpu.memory_space<vmem>>, vector<1x1x128xf32>,
    return
  }
  func.func @transform_0(%arg0: i32, %arg1: i32) -> (i32, i32, i32, i32) {
    %c0_i32 = arith.constant 0 : i32
    %c0_i32_0 = arith.constant 0 : i32
    %c0_i32_1 = arith.constant 0 : i32
    %c0_i32_2 = arith.constant 0 : i32
    return %arg1, %c0_i32, %c0_i32_0, %c0_i32_1 : i32, i32, i32, i32
  }
  func.func @transform_1(%arg0: i32, %arg1: i32) -> (i32, i32, i32) {
    %c0_i32 = arith.constant 0 : i32
    %c0_i32_0 = arith.constant 0 : i32
    %c0_i32_1 = arith.constant 0 : i32
    return %arg1, %c0_i32, %c0_i32_0 : i32, i32, i32
  }
  func.func @transform_2(%arg0: i32, %arg1: i32) -> (i32, i32, i32) {
    %c0_i32 = arith.constant 0 : i32
    %c0_i32_0 = arith.constant 0 : i32
    %c0_i32_1 = arith.constant 0 : i32
    return %arg1, %c0_i32, %c0_i32_0 : i32, i32, i32
  }
  func.func @transform_3(%arg0: i32, %arg1: i32) -> (i32, i32) {
    %c0_i32 = arith.constant 0 : i32
    %c0_i32_0 = arith.constant 0 : i32
    %c0_i32_1 = arith.constant 0 : i32
    return %c0_i32, %c0_i32_0 : i32, i32
  }
  func.func @transform_4(%arg0: i32, %arg1: i32) -> (i32, i32) {
    %c0_i32 = arith.constant 0 : i32
    %c0_i32_0 = arith.constant 0 : i32
    %c0_i32_1 = arith.constant 0 : i32
    return %c0_i32, %c0_i32_0 : i32, i32
  }
  func.func @transform_5(%arg0: i32, %arg1: i32) -> (i32, i32) {
    %c0_i32 = arith.constant 0 : i32
    %c0_i32_0 = arith.constant 0 : i32
    return %c0_i32, %arg0 : i32, i32
  }
  func.func @transform_6(%arg0: i32, %arg1: i32) -> (i32, i32, i32, i32) {
    %c0_i32 = arith.constant 0 : i32
    %c0_i32_0 = arith.constant 0 : i32
    %c0_i32_1 = arith.constant 0 : i32
    return %arg1, %c0_i32, %c0_i32_0, %arg0 : i32, i32, i32, i32
  }
  func.func @transform_7(%arg0: i32, %arg1: i32) -> (i32, i32, i32) {
    %c0_i32 = arith.constant 0 : i32
    %c0_i32_0 = arith.constant 0 : i32
    return %arg1, %c0_i32, %arg0 : i32, i32, i32
  }
  func.func @transform_8(%arg0: i32, %arg1: i32) -> (i32, i32, i32) {
    %c0_i32 = arith.constant 0 : i32
    %c0_i32_0 = arith.constant 0 : i32
    return %arg1, %c0_i32, %arg0 : i32, i32, i32
  }
}

</mosaic_0001>

<bundles_post_ra>
// kernel: basic_block_dubin_forward.6
= control target key start
LH: loop header
LB: loop body
LE: loop exit
PB: predicated region body
PF: predicated region fallthrough
CT: control target
= control target key end

     0   :  { %s739_s15 = smov 0   ;;  %s741_s16 = smov 0   ;;  %s794_s0 = inlined_call_operand.vmem [shape: f32[2,1,8,8,4], index: 0, kind: input, shape index: {}]   ;;  %s795_s1 = inlined_call_operand.vmem [shape: f32[4,128], index: 1, kind: input, shape index: {}]   ;;  %s796_s2 = inlined_call_operand.vmem [shape: f32[2,8,8,128], index: 2, kind: output, shape index: {0}]   ;;  %s797_s3 = inlined_call_operand.vmem [shape: f32[2,1,128], index: 3, kind: output, shape index: {1}]   ;;  %s798_s4 = inlined_call_operand.vmem [shape: f32[2,1,128], index: 4, kind: output, shape index: {2}]  }
   0x1   :  { %s743_s17 = smov 0  }
   0x2 LB: > { %s24_s18 = sadd.s32 1, %s708_s16  ;;  %p623_p0 = scmp.ge.s32.totalorder %s712_s17, 1  ;;  %s712_s17 = sphi %s743_s17, %s15_s17   ;;  %s708_s16 = sphi %s741_s16, %s800_s16   ;;  %s704_s15 = sphi %s739_s15, %s799_s15  }
   0x3   : > { %p25_p1 = scmp.ge.s32.totalorder %s24_s18, 2  ;;  %p194_p2 = scmp.lt.s32.totalorder %s712_s17, 3 }
   0x5   : > { %s802_s18 = smov (%p25_p1, %s24_s18), 0  ;;  %p195_p3 = pnand %p623_p0, %p194_p2 }
   0x6   : > { %v276_v0 = vld [vmem:[%s795_s1] sm:$0xf] (!%p195_p3)  ;;  %vm302_vm0 = vcmask (!%p195_p3), 1043456   ;;  %p239_p4 = scmp.lt.s32.totalorder (!%p195_p3), %s704_s15, 1  ;;  %vm277_vm1 = vcmask (!%p195_p3), 31744  }
   0x7   : > { %198 = sbr.rel (%p195_p3) target bundleno = 263 (0x107), region = 28  ;;  %650 = vmatprep.subr.msk.mxu0 (!%p195_p3), %vm302_vm0, %v276_v0  ;;  %664 = vmatprep.subr.msk.mxu1 (!%p195_p3), %vm302_vm0, %v276_v0 }
   0x8   : > { %651 = vmatpush3.msk.msra.mxu0 (!%p195_p3), %vm302_vm0, %v276_v0  ;;  %665 = vmatpush3.msk.msra.mxu1 (!%p195_p3), %vm302_vm0, %v276_v0 }
   0xe   : > { %s804_s15 = smov (!%p239_p4, %s704_s15), 1 }
   0xf   : > { %s639_s21 = sshll.u32 %s804_s15, 6  ;;  %s261_s30 = scalar_lea.vmem %s797_s3, %s804_s15 }
  0x10   : > { %s243_s24 = scalar_lea.vmem %s794_s0, %s639_s21  ;;  %s255_s27 = scalar_lea.vmem %s796_s2, %s639_s21 }
  0x11   : > { %v268_v1 = vld [vmem:[%s243_s24] sm:$0xff]  ;;  %v269_v2 = vld [vmem:[%s243_s24 + $0x8] sm:$0xff]  ;;  %v270_v3 = vld [vmem:[%s243_s24 + $0x10] sm:$0xff]  ;;  %s267_s7 = scalar_lea.vmem %s798_s4, %s804_s15 }
  0x12   : > { %652 = vmatprep.mubr.msk.f32.mxu0 %vm277_vm1, %v268_v1  ;;  %v272_v4 = vld [vmem:[%s243_s24 + $0x20] sm:$0xff]  ;;  %v273_v5 = vld [vmem:[%s243_s24 + $0x28] sm:$0xff]  ;;  %v274_v6 = vld [vmem:[%s243_s24 + $0x30] sm:$0xff] }
  0x13   : > { %653 = vmatmul.mubr.msk.f32.vlgmr.msra.gmra.mrb[0].mxu0 %vm277_vm1, %v269_v2  ;;  %658 = vmatprep.mubr.msk.f32.mxu1 %vm277_vm1, %v272_v4  ;;  %v271_v7 = vld [vmem:[%s243_s24 + $0x18] sm:$0xff] }
  0x14   : > { %655 = vmatprep.mubr.msk.f32.mxu0 %vm277_vm1, %v270_v3  ;;  %659 = vmatmul.mubr.msk.f32.vlgmr.msra.gmra.mrb[0].mxu1 %vm277_vm1, %v273_v5  ;;  %v275_v8 = vld [vmem:[%s243_s24 + $0x38] sm:$0xff] }
  0x15   : > { %661 = vmatprep.mubr.msk.f32.mxu1 %vm277_vm1, %v274_v6 }
  0x17   : > { %656 = vmatmul.mubr.msk.f32.gmra.mrb[2].mxu0 %vm277_vm1, %v271_v7 }
  0x18   : > { %662 = vmatmul.mubr.msk.f32.gmra.mrb[2].mxu1 %vm277_vm1, %v275_v8 }
  0xe6   : > { %v654_v9 = vpop.f32.mrb[0].mxu0 }
  0xe7   : > { %412 = vst [vmem:[%s255_s27 + $0x8] sm:$0xff] %v654_v9  ;;  %v434_v10 = vmul.f32 %v654_v9, %v654_v9  ;;  %v372_v11 = vpop.f32.mrb[1].mxu0  ;;  %v660_v12 = vpop.f32.mrb[0].mxu1 }
  0xe8   : > { %411 = vst [vmem:[%s255_s27] sm:$0xff] %v372_v11  ;;  %v419_v13 = vadd.f32 %v654_v9, %v372_v11  ;;  %v433_v14 = vmul.f32 %v372_v11, %v372_v11  ;;  %416 = vst [vmem:[%s255_s27 + $0x28] sm:$0xff] %v660_v12  ;;  %v392_v15 = vpop.f32.mrb[1].mxu1  ;;  %v438_v29 = vmul.f32 %v660_v12, %v660_v12 }
  0xe9   : > { %415 = vst [vmem:[%s255_s27 + $0x20] sm:$0xff] %v392_v15  ;;  %v437_v26 = vmul.f32 %v392_v15, %v392_v15 }
  0xea   : > { %v441_v16 = vadd.f32 %v434_v10, %v433_v14  ;;  %v657_v17 = vpop.f32.mrb[2].mxu0 }
  0xeb   : > { %414 = vst [vmem:[%s255_s27 + $0x18] sm:$0xff] %v657_v17  ;;  %v382_v18 = vpop.f32.mrb[3].mxu0  ;;  %v663_v19 = vpop.f32.mrb[2].mxu1  ;;  %v436_v23 = vmul.f32 %v657_v17, %v657_v17 }
  0xec   : > { %413 = vst [vmem:[%s255_s27 + $0x10] sm:$0xff] %v382_v18  ;;  %v420_v20 = vadd.f32 %v419_v13, %v382_v18  ;;  %v435_v21 = vmul.f32 %v382_v18, %v382_v18  ;;  %418 = vst [vmem:[%s255_s27 + $0x38] sm:$0xff] %v663_v19  ;;  %v402_v22 = vpop.f32.mrb[3].mxu1  ;;  %v440_v35 = vmul.f32 %v663_v19, %v663_v19 }
  0xed   : > { %417 = vst [vmem:[%s255_s27 + $0x30] sm:$0xff] %v402_v22  ;;  %v439_v32 = vmul.f32 %v402_v22, %v402_v22 }
  0xee   : > { %v421_v24 = vadd.f32 %v657_v17, %v420_v20  ;;  %v442_v25 = vadd.f32 %v441_v16, %v435_v21 }
  0xf0   : > { %v443_v27 = vadd.f32 %v442_v25, %v436_v23  ;;  %v422_v28 = vadd.f32 %v421_v24, %v392_v15 }
  0xf2   : > { %v444_v30 = vadd.f32 %v443_v27, %v437_v26  ;;  %v423_v31 = vadd.f32 %v660_v12, %v422_v28 }
  0xf4   : > { %v424_v33 = vadd.f32 %v423_v31, %v402_v22  ;;  %v445_v34 = vadd.f32 %v444_v30, %v438_v29 }
  0xf6   : > { %v425_v36 = vadd.f32 %v663_v19, %v424_v33  ;;  %v446_v37 = vadd.f32 %v445_v34, %v439_v32 }
  0xf8   : > { %v426_v38 = vrot.slane %v425_v36, 4  ;;  %v447_v39 = vadd.f32 %v446_v37, %v440_v35 }
  0xfa   : > { %v427_v40 = vadd.f32 %v426_v38, %v425_v36  ;;  %v448_v41 = vrot.slane %v447_v39, 4 }
  0xfc   : > { %v428_v42 = vrot.slane %v427_v40, 2  ;;  %v449_v43 = vadd.f32 %v448_v41, %v447_v39 }
  0xfe   : > { %v429_v44 = vadd.f32 %v428_v42, %v427_v40  ;;  %v450_v45 = vrot.slane %v449_v43, 2 }
 0x100   : > { %v430_v46 = vrot.slane %v429_v44, 1  ;;  %v451_v47 = vadd.f32 %v450_v45, %v449_v43 }
 0x102   : > { %v431_v48 = vadd.f32 %v430_v46, %v429_v44  ;;  %v452_v49 = vrot.slane %v451_v47, 1 }
 0x104   : > { %432 = vst [vmem:[%s261_s30] sm:$0x1] %v431_v48  ;;  %v453_v50 = vadd.f32 %v452_v49, %v451_v47 }
 0x106   : > { %454 = vst [vmem:[%s267_s7] sm:$0x1] %v453_v50 }
 0x107 PF: > { %s15_s17 = sadd.s32 1, %s712_s17   ;;  %s799_s15 = smov %s708_s16 }
 0x108   : > { %p12_p5 = scmp.ge.s32.totalorder %s15_s17, 4   ;;  %s800_s16 = smov %s802_s18 }
 0x10a   :  { %14 = sbr.rel (!%p12_p5) target bundleno = 2 (0x2), region = 85 }

// kernel: basic_block_dubin_forward.4
= control target key start
LH: loop header
LB: loop body
LE: loop exit
PB: predicated region body
PF: predicated region fallthrough
CT: control target
= control target key end

     0   :  { %s1228_s15 = smov 0   ;;  %s1230_s16 = smov 0   ;;  %s1617_s0 = inlined_call_operand.vmem [shape: f32[2,4,9,9,4], index: 0, kind: input, shape index: {}]   ;;  %s1618_s1 = inlined_call_operand.vmem [shape: f32[36,128], index: 1, kind: input, shape index: {}]   ;;  %s1619_s2 = inlined_call_operand.vmem [shape: f32[2,8,8,128], index: 2, kind: output, shape index: {0}]   ;;  %s1620_s3 = inlined_call_operand.vmem [shape: f32[2,1,128], index: 3, kind: output, shape index: {1}]   ;;  %s1621_s4 = inlined_call_operand.vmem [shape: f32[2,1,128], index: 4, kind: output, shape index: {2}]  }
   0x1   :  { %s1232_s17 = smov 0  }
   0x2 LB: > { %s24_s18 = sadd.s32 1, %s1189_s16  ;;  %p1040_p0 = scmp.ge.s32.totalorder %s1193_s17, 1  ;;  %s1193_s17 = sphi %s1232_s17, %s15_s17   ;;  %s1189_s16 = sphi %s1230_s16, %s1623_s16   ;;  %s1185_s15 = sphi %s1228_s15, %s1622_s15  }
   0x3   : > { %p25_p1 = scmp.ge.s32.totalorder %s24_s18, 2  ;;  %p194_p2 = scmp.lt.s32.totalorder %s1193_s17, 3 }
   0x5   : > { %s1625_s18 = smov (%p25_p1, %s24_s18), 0  ;;  %p195_p3 = pnand %p1040_p0, %p194_p2 }
   0x6   : > { %p239_p4 = scmp.lt.s32.totalorder (!%p195_p3), %s1185_s15, 1  ;;  %s1195_s23 = smov (!%p195_p3), 12   ;;  %vm370_vm0 = vcmask (!%p195_p3), 1046528   ;;  %vm719_vm1 = vcmask (!%p195_p3), 1043456   ;;  %vm617_vm2 = vcmask (!%p195_p3), 31744   ;;  %vm626_vm3 = vcmask (!%p195_p3), 64512  }
   0x7   : > { %198 = sbr.rel (%p195_p3) target bundleno = 493 (0x1ed), region = 28  ;;  %s1196_s24 = smov (!%p195_p3), 4   ;;  %vm635_vm4 = vcmask (!%p195_p3), 97280   ;;  %vm644_vm5 = vcmask (!%p195_p3), 130048   ;;  %vm653_vm6 = vcmask (!%p195_p3), 162816   ;;  %vm662_vm7 = vcmask (!%p195_p3), 195584  }
   0x8   : > { %s1197_s25 = smov (!%p195_p3), 8   ;;  %s1198_s26 = smov (!%p195_p3), 16   ;;  %vm671_vm8 = vcmask (!%p195_p3), 228352   ;;  %vm680_vm9 = vcmask (!%p195_p3), 261120   ;;  %vm694_vm10 = vcmask (!%p195_p3), 293888  }
   0x9   : > { %s1199_s27 = smov (!%p195_p3), 20   ;;  %s1200_s6 = smov (!%p195_p3), 24  }
   0xa   : > { %s1201_s13 = smov (!%p195_p3), 28   ;;  %s1202_s14 = smov (!%p195_p3), 32  }
   0xe   : > { %s1627_s15 = smov (!%p239_p4, %s1185_s15), 1 }
   0xf   : > { %s1138_s19 = smul.u32 576, %s1627_s15  ;;  %s267_s28 = scalar_lea.vmem %s1621_s4, %s1627_s15 }
  0x11   : > { %s1252_s22 = scalar_lea.vmem %s1617_s0, %s1138_s19  ;;  %s1088_s19 = sshll.u32 %s1627_s15, 6 }
  0x12   : > { %v1255_v0 = vld [vmem:[%s1252_s22 + $0x130] sm:$0xff]  ;;  %v1262_v2 = vld [vmem:[%s1252_s22] sm:$0xff]  ;;  %v269_v3 = vld [vmem:[%s1252_s22 + $0x8] sm:$0x1] }
  0x13   : > { %v1044_v1 = vld [vmem:[%s1252_s22 + $0x90] sm:$0xff]  ;;  %429 = vrot.lane.b32.xlu1 %v1255_v0, %s1195_s23  ;;  %v1266_v4 = vld [vmem:[%s1252_s22 + $0xa0] sm:$0xff]  ;;  %v371_v5 = vrot.slane %v1262_v2, 1  ;;  %v372_v6 = vrot.slane %v269_v3, 1  ;;  %v271_v8 = vld [vmem:[%s1252_s22 + $0x18] sm:$0x1] }
  0x14   : > { %330 = vrot.lane.b32.xlu0 %v1044_v1, %s1196_s24  ;;  %v1270_v7 = vld [vmem:[%s1252_s22 + $0x10] sm:$0xff]  ;;  %v375_v10 = vrot.slane %v271_v8, 1  ;;  %v1053_v12 = vld [vmem:[%s1252_s22 + $0x120] sm:$0xff]  ;;  %v1054_v14 = vld [vmem:[%s1252_s22 + $0x128] sm:$0x1]  ;;  %v494_v40 = vrot.slane %v1255_v0, 1 }
  0x15   : > { %v374_v9 = vrot.slane %v1270_v7, 1  ;;  %v373_v11 = vsel %vm370_vm0, %v371_v5, %v372_v6  ;;  %v1287_v15 = vld [vmem:[%s1252_s22 + $0x20] sm:$0xff]  ;;  %v491_v16 = vrot.slane %v1053_v12, 1  ;;  %v1069_v17 = vld [vmem:[%s1252_s22 + $0x1b0] sm:$0xff]  ;;  %v492_v19 = vrot.slane %v1054_v14, 1 }
  0x16   : > { %v1291_v18 = vld [vmem:[%s1252_s22 + $0xb0] sm:$0xff]  ;;  %v273_v20 = vld [vmem:[%s1252_s22 + $0x28] sm:$0x1]  ;;  %v1295_v21 = vld [vmem:[%s1252_s22 + $0x160] sm:$0xff]  ;;  %v377_v23 = vrot.slane %v1287_v15, 1 }
  0x17   : > { %395 = vrot.lane.b32.xlu1 %v373_v11, %s1197_s25  ;;  %v1280_v13 = vsel %vm370_vm0, %v374_v9, %v375_v10  ;;  %v1070_v22 = vld [vmem:[%s1252_s22 + $0x1c0] sm:$0xff]  ;;  %v503_v24 = vrot.slane %v1295_v21, 1  ;;  %v1301_v25 = vld [vmem:[%s1252_s22 + $0x170] sm:$0xff]  ;;  %v378_v26 = vrot.slane %v273_v20, 1  ;;  %v1056_v27 = vld [vmem:[%s1252_s22 + $0x138] sm:$0x1]  ;;  %v493_v30 = vsel %vm370_vm0, %v491_v16, %v492_v19 }
  0x18   : > { %332 = vrot.lane.b32.xlu0 %v1266_v4, %s1196_s24  ;;  %v506_v28 = vrot.slane %v1301_v25, 1  ;;  %v1062_v29 = vld [vmem:[%s1252_s22 + $0x168] sm:$0x1]  ;;  %v1311_v32 = vld [vmem:[%s1252_s22 + $0x60] sm:$0xff]  ;;  %v1064_v34 = vld [vmem:[%s1252_s22 + $0x178] sm:$0x1] }
  0x19   : > { %v504_v31 = vrot.slane %v1062_v29, 1  ;;  %v281_v33 = vld [vmem:[%s1252_s22 + $0x68] sm:$0x1]  ;;  %v389_v35 = vrot.slane %v1311_v32, 1  ;;  %v507_v37 = vrot.slane %v1064_v34, 1  ;;  %v1317_v38 = vld [vmem:[%s1252_s22 + $0x70] sm:$0xff]  ;;  %v1346_v52 = vsel %vm370_vm0, %v377_v23, %v378_v26 }
  0x1a   : > { %v390_v36 = vrot.slane %v281_v33, 1  ;;  %v283_v39 = vld [vmem:[%s1252_s22 + $0x78] sm:$0x1]  ;;  %v392_v42 = vrot.slane %v1317_v38, 1  ;;  %v1326_v44 = vld [vmem:[%s1252_s22 + $0x180] sm:$0xff]  ;;  %v1329_v45 = vld [vmem:[%s1252_s22 + $0x190] sm:$0xff] }
  0x1b   : > { %397 = vrot.lane.b32.xlu1 %v1280_v13, %s1197_s25  ;;  %v1322_v41 = vsel %vm370_vm0, %v503_v24, %v504_v31  ;;  %v393_v43 = vrot.slane %v283_v39, 1  ;;  %v1334_v46 = vld [vmem:[%s1252_s22 + $0xc0] sm:$0xff]  ;;  %v1340_v48 = vsel %vm370_vm0, %v506_v28, %v507_v37  ;;  %v509_v49 = vrot.slane %v1326_v44, 1  ;;  %v1066_v51 = vld [vmem:[%s1252_s22 + $0x188] sm:$0x1]  ;;  %v1349_v54 = vld [vmem:[%s1252_s22 + $0x30] sm:$0xff] }
  0x1c   : > { %427 = vrot.lane.b32.xlu0 %v1053_v12, %s1195_s23  ;;  %v1337_v47 = vsel %vm370_vm0, %v389_v35, %v390_v36  ;;  %v512_v50 = vrot.slane %v1329_v45, 1  ;;  %v495_v53 = vrot.slane %v1056_v27, 1  ;;  %v510_v56 = vrot.slane %v1066_v51, 1  ;;  %v1068_v57 = vld [vmem:[%s1252_s22 + $0x198] sm:$0x1]  ;;  %v1356_v58 = vld [vmem:[%s1252_s22 + $0x80] sm:$0xff] }
  0x1d   : > { %v1352_v55 = vsel %vm370_vm0, %v392_v42, %v393_v43  ;;  %v275_v59 = vld [vmem:[%s1252_s22 + $0x38] sm:$0x1]  ;;  %v513_v60 = vrot.slane %v1068_v57, 1  ;;  %v590_v61 = vrot.slane %v1356_v58, 1  ;;  %v285_v62 = vld [vmem:[%s1252_s22 + $0x88] sm:$0x1] }
  0x1e   : > { %v1362_v63 = vsel %vm370_vm0, %v509_v49, %v510_v56  ;;  %v591_v0 = vrot.slane %v285_v62, 1  ;;  %v496_v3 = vsel %vm370_vm0, %v494_v40, %v495_v53  ;;  %v380_v5 = vrot.slane %v1349_v54, 1  ;;  %v689_v9 = vld [vmem:[%s1618_s1] sm:$0xff]  ;;  %v690_v10 = vld [vmem:[%s1618_s1 + $0x8] sm:$0xff]  ;;  %v691_v16 = vld [vmem:[%s1618_s1 + $0x10] sm:$0xff] }
  0x1f   : > { %334 = vrot.lane.b32.xlu1 %v1291_v18, %s1196_s24  ;;  %v1369_v1 = vsel %vm370_vm0, %v512_v50, %v513_v60  ;;  %v381_v6 = vrot.slane %v275_v59, 1  ;;  %v1124_v11 = vpack.c.bf16 %v690_v10, %v689_v9  ;;  %v1057_v14 = vld [vmem:[%s1252_s22 + $0x140] sm:$0xff]  ;;  %v1071_v23 = vld [vmem:[%s1252_s22 + $0x1d0] sm:$0xff]  ;;  %v1058_v24 = vld [vmem:[%s1252_s22 + $0x148] sm:$0x1] }
  0x20   : > { %459 = vrot.lane.b32.xlu0 %v1069_v17, %s1198_s26  ;;  %v1374_v8 = vsel %vm370_vm0, %v590_v61, %v591_v0  ;;  %v692_v17 = vld [vmem:[%s1618_s1 + $0x18] sm:$0xff]  ;;  %v693_v20 = vld [vmem:[%s1618_s1 + $0x20] sm:$0xf]  ;;  %v1048_v26 = vld [vmem:[%s1252_s22 + $0xd0] sm:$0xff]  ;;  %v498_v28 = vrot.slane %v1058_v24, 1 }
  0x21   : > { %v1386_v12 = vsel %vm370_vm0, %v380_v5, %v381_v6  ;;  %1125 = vmatprep.subr.bf16.mxu0 %v1124_v11  ;;  %1132 = vmatprep.subr.bf16.mxu1 %v1124_v11  ;;  %v1128_v19 = vpack.c.bf16 %v692_v17, %v691_v16  ;;  %v1072_v27 = vld [vmem:[%s1252_s22 + $0x1e0] sm:$0xff]  ;;  %v1431_v39 = vld [vmem:[%s1252_s22 + $0x50] sm:$0xff]  ;;  %v279_v40 = vld [vmem:[%s1252_s22 + $0x58] sm:$0x1] }
  0x22   : > { %1127 = vmatpush3.bf16.msra.mxu0 %v1124_v11  ;;  %1135 = vmatpush3.bf16.msra.mxu1 %v1124_v11  ;;  %v1417_v29 = vld [vmem:[%s1252_s22 + $0x40] sm:$0xff]  ;;  %v386_v43 = vrot.slane %v1431_v39, 1  ;;  %v387_v49 = vrot.slane %v279_v40, 1  ;;  %v1073_v51 = vld [vmem:[%s1252_s22 + $0x1f0] sm:$0xff] }
  0x23   : > { %515 = vrot.lane.b32.xlu1 %v493_v30, %s1199_s27  ;;  %1129 = vmatprep.subr.bf16.mxu0 %v1128_v19  ;;  %v277_v30 = vld [vmem:[%s1252_s22 + $0x48] sm:$0x1]  ;;  %v383_v31 = vrot.slane %v1417_v29, 1  ;;  %v1049_v35 = vld [vmem:[%s1252_s22 + $0xe0] sm:$0xff] }
  0x24   : > { %461 = vrot.lane.b32.xlu0 %v1070_v22, %s1198_s26  ;;  %1133 = vmatprep.subr.bf16.mxu1 %v1128_v19  ;;  %v1059_v22 = vld [vmem:[%s1252_s22 + $0x150] sm:$0xff]  ;;  %v384_v33 = vrot.slane %v277_v30, 1  ;;  %v388_v50 = vsel %vm370_vm0, %v386_v43, %v387_v49 }
  0x25   : > { %v500_v34 = vrot.slane %v1059_v22, 1 }
  0x26   : > { %1131 = vmatpush3.bf16.msra.mxu0 %v1128_v19  ;;  %1136 = vmatpush3.bf16.msra.mxu1 %v1128_v19  ;;  %v385_v36 = vsel %vm370_vm0, %v383_v31, %v384_v33 }
  0x27   : > { %399 = vrot.lane.b32.xlu1 %v1346_v52, %s1197_s25  ;;  %1110 = vmatprep.subr.msk.mxu0 %vm719_vm1, %v693_v20 }
  0x28   : > { %336 = vrot.lane.b32.xlu0 %v1334_v46, %s1196_s24  ;;  %1134 = vmatprep.subr.msk.mxu1 %vm719_vm1, %v693_v20 }
  0x2a   : > { %1111 = vmatpush3.msk.msra.mxu0 %vm719_vm1, %v693_v20  ;;  %1137 = vmatpush3.msk.msra.mxu1 %vm719_vm1, %v693_v20 }
  0x2b   : > { %540 = vrot.lane.b32.xlu1 %v1270_v7, %s1200_s6 }
  0x2c   : > { %517 = vrot.lane.b32.xlu0 %v496_v3, %s1199_s27 }
  0x2f   : > { %431 = vrot.lane.b32.xlu1 %v1057_v14, %s1195_s23 }
  0x30   : > { %401 = vrot.lane.b32.xlu0 %v1386_v12, %s1197_s25 }
  0x33   : > { %565 = vrot.lane.b32.xlu1 %v1266_v4, %s1201_s13  ;;  %v497_v4 = vrot.slane %v1057_v14, 1 }
  0x34   : > { %542 = vrot.lane.b32.xlu0 %v1287_v15, %s1200_s6 }
  0x37   : > { %463 = vrot.lane.b32.xlu1 %v1071_v23, %s1198_s26 }
  0x38   : > { %433 = vrot.lane.b32.xlu0 %v1059_v22, %s1195_s23 }
  0x3b   : > { %593 = vrot.lane.b32.xlu1 %v1280_v13, %s1202_s14  ;;  %v1060_v13 = vld [vmem:[%s1252_s22 + $0x158] sm:$0x1] }
  0x3c   : > { %567 = vrot.lane.b32.xlu0 %v1291_v18, %s1201_s13  ;;  %v499_v18 = vsel %vm370_vm0, %v497_v4, %v498_v28  ;;  %v501_v37 = vrot.slane %v1060_v13, 1 }
  0x3e   : > { %v502_v42 = vsel %vm370_vm0, %v500_v34, %v501_v37 }
  0x3f   : > { %465 = vrot.lane.b32.xlu1 %v1072_v27, %s1198_s26 }
  0x40   : > { %338 = vrot.lane.b32.xlu0 %v1048_v26, %s1196_s24 }
  0x43   : > { %595 = vrot.lane.b32.xlu1 %v1346_v52, %s1202_s14  ;;  %v1050_v52 = vld [vmem:[%s1252_s22 + $0xf0] sm:$0xff] }
  0x44   : > { %519 = vrot.lane.b32.xlu0 %v499_v18, %s1199_s27 }
  0x47   : > { %403 = vrot.lane.b32.xlu1 %v385_v36, %s1197_s25 }
  0x48   : > { %340 = vrot.lane.b32.xlu0 %v1049_v35, %s1196_s24 }
  0x4b   : > { %544 = vrot.lane.b32.xlu1 %v1349_v54, %s1200_s6 }
  0x4c   : > { %521 = vrot.lane.b32.xlu0 %v502_v42, %s1199_s27 }
  0x4f   : > { %435 = vrot.lane.b32.xlu1 %v1295_v21, %s1195_s23  ;;  %v1074_v21 = vld [vmem:[%s1252_s22 + $0x200] sm:$0xff] }
  0x50   : > { %405 = vrot.lane.b32.xlu0 %v388_v50, %s1197_s25 }
  0x53   : > { %569 = vrot.lane.b32.xlu1 %v1334_v46, %s1201_s13  ;;  %v1076_v46 = vld [vmem:[%s1252_s22 + $0x220] sm:$0xff] }
  0x54   : > { %546 = vrot.lane.b32.xlu0 %v1417_v29, %s1200_s6 }
  0x57   : > { %467 = vrot.lane.b32.xlu1 %v1073_v51, %s1198_s26 }
  0x58   : > { %437 = vrot.lane.b32.xlu0 %v1301_v25, %s1195_s23  ;;  %v1051_v25 = vld [vmem:[%s1252_s22 + $0x100] sm:$0xff] }
  0x5b   : > { %597 = vrot.lane.b32.xlu1 %v1386_v12, %s1202_s14 }
  0x5c   : > { %571 = vrot.lane.b32.xlu0 %v1048_v26, %s1201_s13 }
  0x5f   : > { %469 = vrot.lane.b32.xlu1 %v1074_v21, %s1198_s26 }
  0x60   : > { %342 = vrot.lane.b32.xlu0 %v1050_v52, %s1196_s24 }
  0x63   : > { %599 = vrot.lane.b32.xlu1 %v385_v36, %s1202_s14 }
  0x64   : > { %523 = vrot.lane.b32.xlu0 %v1322_v41, %s1199_s27  ;;  %v1075_v41 = vld [vmem:[%s1252_s22 + $0x210] sm:$0xff] }
  0x67   : > { %407 = vrot.lane.b32.xlu1 %v1337_v47, %s1197_s25 }
  0x68   : > { %344 = vrot.lane.b32.xlu0 %v1051_v25, %s1196_s24 }
  0x6b   : > { %548 = vrot.lane.b32.xlu1 %v1431_v39, %s1200_s6 }
  0x6c   : > { %525 = vrot.lane.b32.xlu0 %v1340_v48, %s1199_s27  ;;  %v1052_v48 = vld [vmem:[%s1252_s22 + $0x110] sm:$0xff]  ;;  %s1590_s22 = scalar_lea.vmem %s1619_s2, %s1088_s19 }
  0x6f   : > { %439 = vrot.lane.b32.xlu1 %v1326_v44, %s1195_s23 }
  0x70   : > { %409 = vrot.lane.b32.xlu0 %v1352_v55, %s1197_s25  ;;  %s261_s25 = scalar_lea.vmem %s1620_s3, %s1627_s15 }
  0x73   : > { %573 = vrot.lane.b32.xlu1 %v1049_v35, %s1201_s13 }
  0x74   : > { %550 = vrot.lane.b32.xlu0 %v1311_v32, %s1200_s6 }
  0x77   : > { %471 = vrot.lane.b32.xlu1 %v1075_v41, %s1198_s26 }
  0x78   : > { %441 = vrot.lane.b32.xlu0 %v1329_v45, %s1195_s23 }
  0x7b   : > { %601 = vrot.lane.b32.xlu1 %v388_v50, %s1202_s14 }
  0x7c   : > { %575 = vrot.lane.b32.xlu0 %v1050_v52, %s1201_s13 }
  0x7f   : > { %527 = vrot.lane.b32.xlu1 %v1362_v63, %s1199_s27 }
  0x80   : > { %473 = vrot.lane.b32.xlu0 %v1076_v46, %s1198_s26 }
  0x83   : > { %529 = vrot.lane.b32.xlu1 %v1369_v1, %s1199_s27 }
  0x84   : > { %603 = vrot.lane.b32.xlu0 %v1337_v47, %s1202_s14 }
  0x85   : > { %v430_v44 = vpop.permute.xlu1 %429 }
  0x86   : > { %v331_v45 = vpop.permute.xlu0 %330 }
  0x87   : > { %554 = vrot.lane.b32.xlu1 %v1356_v58, %s1200_s6 }
  0x88   : > { %552 = vrot.lane.b32.xlu0 %v1317_v38, %s1200_s6 }
  0x89   : > { %v396_v56 = vpop.permute.xlu1 %395 }
  0x8a   : > { %v333_v53 = vpop.permute.xlu0 %332 }
  0x8b   : > { %579 = vrot.lane.b32.xlu1 %v1052_v48, %s1201_s13 }
  0x8c   : > { %577 = vrot.lane.b32.xlu0 %v1051_v25, %s1201_s13 }
  0x8d   : > { %v398_v47 = vpop.permute.xlu1 %397 }
  0x8e   : > { %v428_v57 = vpop.permute.xlu0 %427 }
  0x8f   : > { %607 = vrot.lane.b32.xlu1 %v1374_v8, %s1202_s14 }
  0x90   : > { %605 = vrot.lane.b32.xlu0 %v1352_v55, %s1202_s14  ;;  %v618_v55 = vsel %vm617_vm2, %v1262_v2, %v331_v45  ;;  %v619_v2 = vsel %vm617_vm2, %v1270_v7, %v333_v53 }
  0x91   : > { %v335_v60 = vpop.permute.xlu1 %334  ;;  %v627_v8 = vsel %vm626_vm3, %v618_v55, %v396_v56  ;;  %v628_v23 = vsel %vm626_vm3, %v619_v2, %v398_v47 }
  0x92   : > { %v460_v59 = vpop.permute.xlu0 %459  ;;  %v636_v10 = vsel %vm635_vm4, %v627_v8, %v428_v57  ;;  %v637_v4 = vsel %vm635_vm4, %v628_v23, %v430_v44  ;;  %v620_v50 = vsel %vm617_vm2, %v1287_v15, %v335_v60 }
  0x93   : > { %v645_v14 = vsel %vm644_vm5, %v636_v10, %v460_v59 }
  0x95   : > { %v516_v62 = vpop.permute.xlu1 %515 }
  0x96   : > { %v462_v61 = vpop.permute.xlu0 %461  ;;  %v654_v16 = vsel %vm653_vm6, %v645_v14, %v516_v62 }
  0x97   : > { %v646_v28 = vsel %vm644_vm5, %v637_v4, %v462_v61 }
  0x99   : > { %v400_v63 = vpop.permute.xlu1 %399 }
  0x9a   : > { %v1503_v58 = vpop.permute.xlu0 %336  ;;  %v629_v51 = vsel %vm626_vm3, %v620_v50, %v400_v63 }
  0x9b   : > { %v621_v15 = vsel %vm617_vm2, %v1349_v54, %v1503_v58 }
  0x9d   : > { %v541_v1 = vpop.permute.xlu1 %540 }
  0x9e   : > { %v518_v0 = vpop.permute.xlu0 %517  ;;  %v663_v17 = vsel %vm662_vm7, %v654_v16, %v541_v1 }
  0x9f   : > { %v655_v30 = vsel %vm653_vm6, %v646_v28, %v518_v0 }
  0xa1   : > { %v432_v5 = vpop.permute.xlu1 %431 }
  0xa2   : > { %v402_v3 = vpop.permute.xlu0 %401  ;;  %v638_v52 = vsel %vm635_vm4, %v629_v51, %v432_v5 }
  0xa3   : > { %v630_v57 = vsel %vm626_vm3, %v621_v15, %v402_v3 }
  0xa5   : > { %v566_v9 = vpop.permute.xlu1 %565 }
  0xa6   : > { %v543_v6 = vpop.permute.xlu0 %542  ;;  %v672_v19 = vsel %vm671_vm8, %v663_v17, %v566_v9 }
  0xa7   : > { %v664_v7 = vsel %vm662_vm7, %v655_v30, %v543_v6 }
  0xa9   : > { %v464_v12 = vpop.permute.xlu1 %463 }
  0xaa   : > { %v434_v11 = vpop.permute.xlu0 %433  ;;  %v647_v41 = vsel %vm644_vm5, %v638_v52, %v464_v12 }
  0xab   : > { %v639_v47 = vsel %vm635_vm4, %v630_v57, %v434_v11 }
  0xad   : > { %v594_v22 = vpop.permute.xlu1 %593 }
  0xae   : > { %v568_v20 = vpop.permute.xlu0 %567  ;;  %v681_v24 = vsel %vm680_vm9, %v672_v19, %v594_v22 }
  0xaf   : > { %1112 = vmatprep.mubr.msk.f32.mxu0 %vm694_vm10, %v681_v24  ;;  %v673_v18 = vsel %vm671_vm8, %v664_v7, %v568_v20 }
  0xb1   : > { %v466_v27 = vpop.permute.xlu1 %465 }
  0xb2   : > { %v339_v26 = vpop.permute.xlu0 %338  ;;  %v648_v61 = vsel %vm644_vm5, %v639_v47, %v466_v27 }
  0xb3   : > { %v622_v12 = vsel %vm617_vm2, %v1417_v29, %v339_v26 }
  0xb5   : > { %v596_v33 = vpop.permute.xlu1 %595 }
  0xb6   : > { %v520_v31 = vpop.permute.xlu0 %519  ;;  %v682_v13 = vsel %vm680_vm9, %v673_v18, %v596_v33 }
  0xb7   : > { %1113 = vmatmul.mubr.msk.f32.vlgmr.msra.gmra.mrb[0].mxu0 %vm694_vm10, %v682_v13  ;;  %v656_v46 = vsel %vm653_vm6, %v647_v41, %v520_v31 }
  0xb9   : > { %v404_v35 = vpop.permute.xlu1 %403 }
  0xba   : > { %v341_v34 = vpop.permute.xlu0 %340  ;;  %v631_v14 = vsel %vm626_vm3, %v622_v12, %v404_v35 }
  0xbb   : > { %v623_v29 = vsel %vm617_vm2, %v1431_v39, %v341_v34 }
  0xbd   : > { %v545_v37 = vpop.permute.xlu1 %544 }
  0xbe   : > { %v522_v36 = vpop.permute.xlu0 %521  ;;  %v665_v44 = vsel %vm662_vm7, %v656_v46, %v545_v37 }
  0xbf   : > { %v657_v62 = vsel %vm653_vm6, %v648_v61, %v522_v36 }
  0xc1   : > { %v436_v42 = vpop.permute.xlu1 %435 }
  0xc2   : > { %v406_v40 = vpop.permute.xlu0 %405  ;;  %v640_v16 = vsel %vm635_vm4, %v631_v14, %v436_v42 }
  0xc3   : > { %v632_v26 = vsel %vm626_vm3, %v623_v29, %v406_v40 }
  0xc5   : > { %v570_v49 = vpop.permute.xlu1 %569 }
  0xc6   : > { %v547_v43 = vpop.permute.xlu0 %546  ;;  %v674_v45 = vsel %vm671_vm8, %v665_v44, %v570_v49 }
  0xc7   : > { %v666_v63 = vsel %vm662_vm7, %v657_v62, %v547_v43 }
  0xc9   : > { %v468_v25 = vpop.permute.xlu1 %467 }
  0xca   : > { %v438_v21 = vpop.permute.xlu0 %437  ;;  %v649_v19 = vsel %vm644_vm5, %v640_v16, %v468_v25 }
  0xcb   : > { %v641_v28 = vsel %vm635_vm4, %v632_v26, %v438_v21 }
  0xcd   : > { %v598_v53 = vpop.permute.xlu1 %597 }
  0xce   : > { %v572_v48 = vpop.permute.xlu0 %571  ;;  %v683_v56 = vsel %vm680_vm9, %v674_v45, %v598_v53 }
  0xcf   : > { %1115 = vmatprep.mubr.msk.f32.mxu0 %vm694_vm10, %v683_v56  ;;  %v675_v0 = vsel %vm671_vm8, %v666_v63, %v572_v48 }
  0xd1   : > { %v470_v60 = vpop.permute.xlu1 %469 }
  0xd2   : > { %v343_v59 = vpop.permute.xlu0 %342  ;;  %v650_v18 = vsel %vm644_vm5, %v641_v28, %v470_v60 }
  0xd3   : > { %v624_v40 = vsel %vm617_vm2, %v1311_v32, %v343_v59 }
  0xd5   : > { %v600_v5 = vpop.permute.xlu1 %599 }
  0xd6   : > { %v524_v1 = vpop.permute.xlu0 %523  ;;  %v684_v54 = vsel %vm680_vm9, %v675_v0, %v600_v5 }
  0xd7   : > { %1116 = vmatmul.mubr.msk.f32.gmra.mrb[2].mxu0 %vm694_vm10, %v684_v54  ;;  %v658_v20 = vsel %vm653_vm6, %v649_v19, %v524_v1 }
  0xd9   : > { %v408_v3 = vpop.permute.xlu1 %407 }
  0xda   : > { %v345_v58 = vpop.permute.xlu0 %344  ;;  %v633_v43 = vsel %vm626_vm3, %v624_v40, %v408_v3 }
  0xdb   : > { %v625_v42 = vsel %vm617_vm2, %v1317_v38, %v345_v58 }
  0xdd   : > { %v549_v9 = vpop.permute.xlu1 %548 }
  0xde   : > { %v526_v6 = vpop.permute.xlu0 %525  ;;  %v667_v22 = vsel %vm662_vm7, %v658_v20, %v549_v9 }
  0xdf   : > { %v659_v31 = vsel %vm653_vm6, %v650_v18, %v526_v6 }
  0xe1   : > { %v440_v8 = vpop.permute.xlu1 %439 }
  0xe2   : > { %v410_v55 = vpop.permute.xlu0 %409  ;;  %v642_v50 = vsel %vm635_vm4, %v633_v43, %v440_v8 }
  0xe3   : > { %v634_v49 = vsel %vm626_vm3, %v625_v42, %v410_v55 }
  0xe5   : > { %v574_v11 = vpop.permute.xlu1 %573 }
  0xe6   : > { %v551_v10 = vpop.permute.xlu0 %550  ;;  %v676_v23 = vsel %vm671_vm8, %v667_v22, %v574_v11 }
  0xe7   : > { %v668_v33 = vsel %vm662_vm7, %v659_v31, %v551_v10 }
  0xe9   : > { %v472_v2 = vpop.permute.xlu1 %471 }
  0xea   : > { %v442_v17 = vpop.permute.xlu0 %441  ;;  %v651_v25 = vsel %vm644_vm5, %v642_v50, %v472_v2 }
  0xeb   : > { %v643_v51 = vsel %vm635_vm4, %v634_v49, %v442_v17 }
  0xed   : > { %v602_v4 = vpop.permute.xlu1 %601 }
  0xee   : > { %v576_v24 = vpop.permute.xlu0 %575  ;;  %v685_v27 = vsel %vm680_vm9, %v676_v23, %v602_v4 }
  0xef   : > { %1118 = vmatprep.mubr.msk.f32.mxu1 %vm694_vm10, %v685_v27  ;;  %v677_v13 = vsel %vm671_vm8, %v668_v33, %v576_v24 }
  0xf1   : > { %v528_v7 = vpop.permute.xlu1 %527 }
  0xf2   : > { %v474_v30 = vpop.permute.xlu0 %473  ;;  %v660_v32 = vsel %vm653_vm6, %v651_v25, %v528_v7 }
  0xf3   : > { %v652_v41 = vsel %vm644_vm5, %v643_v51, %v474_v30 }
  0xf5   : > { %v530_v36 = vpop.permute.xlu1 %529 }
  0xf6   : > { %v604_v35 = vpop.permute.xlu0 %603  ;;  %v661_v46 = vsel %vm653_vm6, %v652_v41, %v530_v36 }
  0xf7   : > { %v686_v39 = vsel %vm680_vm9, %v677_v13, %v604_v35 }
  0xf8   : > { %1119 = vmatmul.mubr.msk.f32.vlgmr.msra.gmra.mrb[0].mxu1 %vm694_vm10, %v686_v39 }
  0xf9   : > { %v555_v37 = vpop.permute.xlu1 %554 }
  0xfa   : > { %v553_v34 = vpop.permute.xlu0 %552  ;;  %v670_v44 = vsel %vm662_vm7, %v661_v46, %v555_v37 }
  0xfb   : > { %v669_v38 = vsel %vm662_vm7, %v660_v32, %v553_v34 }
  0xfd   : > { %v580_v21 = vpop.permute.xlu1 %579 }
  0xfe   : > { %v578_v52 = vpop.permute.xlu0 %577  ;;  %v679_v48 = vsel %vm671_vm8, %v670_v44, %v580_v21 }
  0xff   : > { %v678_v45 = vsel %vm671_vm8, %v669_v38, %v578_v52 }
 0x101   : > { %v608_v56 = vpop.permute.xlu1 %607 }
 0x102   : > { %v606_v53 = vpop.permute.xlu0 %605  ;;  %v688_v57 = vsel %vm680_vm9, %v679_v48, %v608_v56 }
 0x103   : > { %v687_v15 = vsel %vm680_vm9, %v678_v45, %v606_v53 }
 0x104   : > { %1121 = vmatprep.mubr.msk.f32.mxu1 %vm694_vm10, %v687_v15 }
 0x105   : > { %1122 = vmatmul.mubr.msk.f32.gmra.mrb[2].mxu1 %vm694_vm10, %v688_v57 }
 0x18a   : > { %v1114_v47 = vpop.f32.mrb[0].mxu0 }
 0x18b   : > { %829 = vst [vmem:[%s1590_s22 + $0x8] sm:$0xff] %v1114_v47  ;;  %v851_v59 = vmul.f32 %v1114_v47, %v1114_v47  ;;  %v789_v60 = vpop.f32.mrb[1].mxu0 }
 0x18c   : > { %828 = vst [vmem:[%s1590_s22] sm:$0xff] %v789_v60  ;;  %v836_v61 = vadd.f32 %v1114_v47, %v789_v60  ;;  %v850_v62 = vmul.f32 %v789_v60, %v789_v60 }
 0x18e   : > { %v858_v63 = vadd.f32 %v851_v59, %v850_v62 }
 0x1aa   : > { %v1117_v0 = vpop.f32.mrb[2].mxu0 }
 0x1ab   : > { %831 = vst [vmem:[%s1590_s22 + $0x18] sm:$0xff] %v1117_v0  ;;  %v799_v1 = vpop.f32.mrb[3].mxu0  ;;  %v853_v58 = vmul.f32 %v1117_v0, %v1117_v0 }
 0x1ac   : > { %830 = vst [vmem:[%s1590_s22 + $0x10] sm:$0xff] %v799_v1  ;;  %v837_v5 = vadd.f32 %v836_v61, %v799_v1  ;;  %v852_v54 = vmul.f32 %v799_v1, %v799_v1 }
 0x1ae   : > { %v838_v3 = vadd.f32 %v1117_v0, %v837_v5  ;;  %v859_v6 = vadd.f32 %v858_v63, %v852_v54 }
 0x1b0   : > { %v860_v9 = vadd.f32 %v859_v6, %v853_v58 }
 0x1cb   : > { %v1120_v55 = vpop.f32.mrb[0].mxu1 }
 0x1cc   : > { %833 = vst [vmem:[%s1590_s22 + $0x28] sm:$0xff] %v1120_v55  ;;  %v809_v8 = vpop.f32.mrb[1].mxu1  ;;  %v855_v12 = vmul.f32 %v1120_v55, %v1120_v55 }
 0x1cd   : > { %832 = vst [vmem:[%s1590_s22 + $0x20] sm:$0xff] %v809_v8  ;;  %v839_v10 = vadd.f32 %v838_v3, %v809_v8  ;;  %v854_v11 = vmul.f32 %v809_v8, %v809_v8 }
 0x1cf   : > { %v861_v14 = vadd.f32 %v860_v9, %v854_v11  ;;  %v840_v16 = vadd.f32 %v1120_v55, %v839_v10 }
 0x1d1   : > { %v862_v17 = vadd.f32 %v861_v14, %v855_v12 }
 0x1d8   : > { %v1123_v2 = vpop.f32.mrb[2].mxu1 }
 0x1d9   : > { %835 = vst [vmem:[%s1590_s22 + $0x38] sm:$0xff] %v1123_v2  ;;  %v819_v19 = vpop.f32.mrb[3].mxu1  ;;  %v857_v23 = vmul.f32 %v1123_v2, %v1123_v2 }
 0x1da   : > { %834 = vst [vmem:[%s1590_s22 + $0x30] sm:$0xff] %v819_v19  ;;  %v841_v20 = vadd.f32 %v840_v16, %v819_v19  ;;  %v856_v22 = vmul.f32 %v819_v19, %v819_v19 }
 0x1dc   : > { %v842_v24 = vadd.f32 %v1123_v2, %v841_v20  ;;  %v863_v4 = vadd.f32 %v862_v17, %v856_v22 }
 0x1de   : > { %v843_v27 = vrot.slane %v842_v24, 4  ;;  %v864_v29 = vadd.f32 %v863_v4, %v857_v23 }
 0x1e0   : > { %v844_v26 = vadd.f32 %v843_v27, %v842_v24  ;;  %v865_v28 = vrot.slane %v864_v29, 4 }
 0x1e2   : > { %v845_v30 = vrot.slane %v844_v26, 2  ;;  %v866_v7 = vadd.f32 %v865_v28, %v864_v29 }
 0x1e4   : > { %v846_v18 = vadd.f32 %v845_v30, %v844_v26  ;;  %v867_v31 = vrot.slane %v866_v7, 2 }
 0x1e6   : > { %v847_v33 = vrot.slane %v846_v18, 1  ;;  %v868_v13 = vadd.f32 %v867_v31, %v866_v7 }
 0x1e8   : > { %v848_v35 = vadd.f32 %v847_v33, %v846_v18  ;;  %v869_v36 = vrot.slane %v868_v13, 1 }
 0x1ea   : > { %849 = vst [vmem:[%s261_s25] sm:$0x1] %v848_v35  ;;  %v870_v39 = vadd.f32 %v869_v36, %v868_v13 }
 0x1ec   : > { %871 = vst [vmem:[%s267_s28] sm:$0x1] %v870_v39 }
 0x1ed PF: > { %s15_s17 = sadd.s32 1, %s1193_s17   ;;  %s1622_s15 = smov %s1189_s16 }
 0x1ee   : > { %p12_p5 = scmp.ge.s32.totalorder %s15_s17, 4   ;;  %s1623_s16 = smov %s1625_s18 }
 0x1f0   :  { %14 = sbr.rel (!%p12_p5) target bundleno = 2 (0x2), region = 88 }

// kernel: basic_block_dubin_forward.7
= control target key start
LH: loop header
LB: loop body
LE: loop exit
PB: predicated region body
PF: predicated region fallthrough
CT: control target
= control target key end

     0   :  { %s673_s13 = smov 0   ;;  %s820_s0 = inlined_call_operand.vmem [shape: f32[2,8,8,8], index: 0, kind: input, shape index: {}]   ;;  %s821_s1 = inlined_call_operand.vmem [shape: f32[2,8,8,8], index: 1, kind: input, shape index: {}]   ;;  %s822_s2 = inlined_call_operand.vmem [shape: f32[1,8], index: 2, kind: input, shape index: {}]   ;;  %s823_s3 = inlined_call_operand.vmem [shape: f32[1,8], index: 3, kind: input, shape index: {}]   ;;  %s824_s4 = inlined_call_operand.vmem [shape: f32[1,8], index: 4, kind: input, shape index: {}]   ;;  %s825_s5 = inlined_call_operand.vmem [shape: f32[1,8], index: 5, kind: input, shape index: {}]   ;;  %s826_s6 = inlined_call_operand.vmem [shape: f32[1,8], index: 6, kind: input, shape index: {}]   ;;  %s827_s7 = inlined_call_operand.vmem [shape: f32[1,8], index: 7, kind: input, shape index: {}]   ;;  %s828_s8 = inlined_call_operand.vmem [shape: f32[1,8], index: 8, kind: input, shape index: {}]   ;;  %s829_s9 = inlined_call_operand.vmem [shape: f32[1,8], index: 9, kind: input, shape index: {}]   ;;  %s830_s10 = inlined_call_operand.vmem [shape: f32[2,8,8,8], index: 10, kind: output, shape index: {}]  }
   0x1 LB: > { %s582_s14 = sadd.s32 4294967295, %s616_s13   ;;  %p586_p0 = scmp.ge.s32.totalorder %s616_s13, 1  ;;  %s616_s13 = sphi %s673_s13, %s20_s13  }
   0x2   : > { %p322_p1 = scmp.lt.s32.totalorder %s616_s13, 3 }
   0x4   : > { %p323_p2 = pnand %p586_p0, %p322_p1 }
   0x5   : > { %p365_p3 = scmp.lt.s32.totalorder (!%p323_p2), %s582_s14, 1  ;;  %v411_v0 = vld [vmem:[%s823_s3] sm:$0x1] (!%p323_p2)  ;;  %v415_v1 = vlaneseq (!%p323_p2)  ;;  %vm506_vm0 = vcmask (!%p323_p2), 64512  }
   0x6   : > { %326 = sbr.rel (%p323_p2) target bundleno = 40 (0x28), region = 60  ;;  %v412_v2 = vld [vmem:[%s824_s4] sm:$0x1] (!%p323_p2) }
   0x7   : > { %v413_v3 = vmul.f32 (!%p323_p2), %v412_v2, %v411_v0  ;;  %v416_v4 = vshrl.u32 (!%p323_p2), %v415_v1, 7  ;;  %v458_v5 = vld [vmem:[%s827_s7] sm:$0x1] (!%p323_p2) }
   0x8   : > { %v459_v6 = vld [vmem:[%s828_s8] sm:$0x1] (!%p323_p2) }
   0x9   : > { %v460_v7 = vmul.f32 (!%p323_p2), %v459_v6, %v458_v5  ;;  %v698_v8 = vld [vmem:[%s822_s2] ss:$0 sm:$0xff] (!%p323_p2)  ;;  %v417_v9 = vsub.s32 (!%p323_p2), 0, %v416_v4 }
   0xa   : > { %v703_v10 = vld [vmem:[%s826_s6] ss:$0 sm:$0xff] (!%p323_p2) }
   0xb   : > { %v719_v13 = vrot.slane (!%p323_p2), %v413_v3, %v417_v9  ;;  %v724_v14 = vld [vmem:[%s825_s5] ss:$0 sm:$0xff] (!%p323_p2)  ;;  %v726_v15 = vrot.slane (!%p323_p2), %v460_v7, %v417_v9 }
   0xc   : > { %v738_v23 = vld [vmem:[%s829_s9] ss:$0 sm:$0xff] (!%p323_p2) }
   0xd   : > { %s832_s14 = smov (!%p365_p3, %s582_s14), 1 }
   0xe   : > { %s693_s23 = sshll.u32 %s832_s14, 6 }
   0xf   : > { %s709_s30 = scalar_lea.vmem %s820_s0, %s693_s23  ;;  %s715_s14 = scalar_lea.vmem %s821_s1, %s693_s23 }
  0x10   : > { %v380_v11 = vld [vmem:[%s709_s30] sm:$0xff]  ;;  %v381_v16 = vld [vmem:[%s709_s30 + $0x8] sm:$0xff]  ;;  %v382_v21 = vld [vmem:[%s709_s30 + $0x10] sm:$0xff]  ;;  %s772_s21 = scalar_lea.vmem %s830_s10, %s693_s23 }
  0x11   : > { %v388_v12 = vld [vmem:[%s715_s14] sm:$0xff]  ;;  %v403_v17 = vsub.f32 %v380_v11, %v698_v8  ;;  %v389_v19 = vld [vmem:[%s715_s14 + $0x8] sm:$0xff]  ;;  %v404_v20 = vsub.f32 %v381_v16, %v698_v8  ;;  %v390_v22 = vld [vmem:[%s715_s14 + $0x10] sm:$0xff]  ;;  %v405_v25 = vsub.f32 %v382_v21, %v698_v8 }
  0x12   : > { %v450_v18 = vsub.f32 %v388_v12, %v703_v10  ;;  %v451_v24 = vsub.f32 %v389_v19, %v703_v10  ;;  %v452_v26 = vsub.f32 %v390_v22, %v703_v10  ;;  %v383_v27 = vld [vmem:[%s709_s30 + $0x18] sm:$0xff]  ;;  %v384_v37 = vld [vmem:[%s709_s30 + $0x20] sm:$0xff]  ;;  %v385_v43 = vld [vmem:[%s709_s30 + $0x28] sm:$0xff] }
  0x13   : > { %v391_v28 = vld [vmem:[%s715_s14 + $0x18] sm:$0xff]  ;;  %v420_v29 = vmul.f32 %v719_v13, %v403_v17  ;;  %v421_v31 = vmul.f32 %v719_v13, %v404_v20  ;;  %v406_v32 = vsub.f32 %v383_v27, %v698_v8  ;;  %v422_v34 = vmul.f32 %v719_v13, %v405_v25  ;;  %v392_v38 = vld [vmem:[%s715_s14 + $0x20] sm:$0xff]  ;;  %v393_v48 = vld [vmem:[%s715_s14 + $0x28] sm:$0xff] }
  0x14   : > { %v467_v30 = vmul.f32 %v726_v15, %v450_v18  ;;  %v468_v33 = vmul.f32 %v726_v15, %v451_v24  ;;  %v469_v35 = vmul.f32 %v726_v15, %v452_v26  ;;  %v453_v36 = vsub.f32 %v391_v28, %v703_v10  ;;  %v386_v57 = vld [vmem:[%s709_s30 + $0x30] sm:$0xff]  ;;  %v387_v63 = vld [vmem:[%s709_s30 + $0x38] sm:$0xff] }
  0x15   : > { %v435_v39 = vadd.f32 %v724_v14, %v420_v29  ;;  %v436_v41 = vadd.f32 %v724_v14, %v421_v31  ;;  %v423_v42 = vmul.f32 %v719_v13, %v406_v32  ;;  %v437_v45 = vadd.f32 %v724_v14, %v422_v34  ;;  %v394_v62 = vld [vmem:[%s715_s14 + $0x30] sm:$0xff]  ;;  %v395_v4 = vld [vmem:[%s715_s14 + $0x38] sm:$0xff] }
  0x16   : > { %v482_v40 = vadd.f32 %v738_v23, %v467_v30  ;;  %v483_v44 = vadd.f32 %v738_v23, %v468_v33  ;;  %v484_v46 = vadd.f32 %v738_v23, %v469_v35  ;;  %v470_v47 = vmul.f32 %v726_v15, %v453_v36 }
  0x17   : > { %v438_v50 = vadd.f32 %v724_v14, %v423_v42  ;;  %v407_v51 = vsub.f32 %v384_v37, %v698_v8  ;;  %v454_v52 = vsub.f32 %v392_v38, %v703_v10  ;;  %v408_v56 = vsub.f32 %v385_v43, %v698_v8 }
  0x18   : > { %v490_v49 = vadd.f32 %v482_v40, %v435_v39  ;;  %v491_v53 = vadd.f32 %v483_v44, %v436_v41  ;;  %v492_v54 = vadd.f32 %v484_v46, %v437_v45  ;;  %v485_v55 = vadd.f32 %v738_v23, %v470_v47 }
  0x19   : > { %v424_v59 = vmul.f32 %v719_v13, %v407_v51  ;;  %v471_v60 = vmul.f32 %v726_v15, %v454_v52  ;;  %v455_v61 = vsub.f32 %v393_v48, %v703_v10  ;;  %v425_v3 = vmul.f32 %v719_v13, %v408_v56 }
  0x1a   : > { %v498_v58 = vmax.f32 %v490_v49, 0.0  ;;  %v499_v0 = vmax.f32 %v491_v53, 0.0  ;;  %v500_v1 = vmax.f32 %v492_v54, 0.0  ;;  %v493_v2 = vadd.f32 %v485_v55, %v438_v50 }
  0x1b   : > { %v439_v5 = vadd.f32 %v724_v14, %v424_v59  ;;  %v486_v6 = vadd.f32 %v738_v23, %v471_v60  ;;  %v472_v7 = vmul.f32 %v726_v15, %v455_v61  ;;  %v409_v9 = vsub.f32 %v386_v57, %v698_v8 }
  0x1c   : > { %507 = vst.msk [vmem:[%s772_s21] sm:$0xff] %vm506_vm0, %v498_v58  ;;  %508 = vst.msk [vmem:[%s772_s21 + $0x8] sm:$0xff] %vm506_vm0, %v499_v0  ;;  %v501_v11 = vmax.f32 %v493_v2, 0.0  ;;  %v440_v12 = vadd.f32 %v724_v14, %v425_v3  ;;  %v456_v16 = vsub.f32 %v394_v62, %v703_v10  ;;  %v410_v17 = vsub.f32 %v387_v63, %v698_v8 }
  0x1d   : > { %509 = vst.msk [vmem:[%s772_s21 + $0x10] sm:$0xff] %vm506_vm0, %v500_v1  ;;  %v494_v18 = vadd.f32 %v486_v6, %v439_v5  ;;  %v487_v19 = vadd.f32 %v738_v23, %v472_v7  ;;  %v426_v20 = vmul.f32 %v719_v13, %v409_v9  ;;  %v457_v21 = vsub.f32 %v395_v4, %v703_v10 }
  0x1e   : > { %510 = vst.msk [vmem:[%s772_s21 + $0x18] sm:$0xff] %vm506_vm0, %v501_v11  ;;  %v473_v22 = vmul.f32 %v726_v15, %v456_v16  ;;  %v427_v24 = vmul.f32 %v719_v13, %v410_v17 }
  0x1f   : > { %v502_v25 = vmax.f32 %v494_v18, 0.0  ;;  %v495_v26 = vadd.f32 %v487_v19, %v440_v12  ;;  %v441_v8 = vadd.f32 %v724_v14, %v426_v20  ;;  %v474_v27 = vmul.f32 %v726_v15, %v457_v21 }
  0x20   : > { %v488_v28 = vadd.f32 %v738_v23, %v473_v22  ;;  %v442_v29 = vadd.f32 %v724_v14, %v427_v24 }
  0x21   : > { %511 = vst.msk [vmem:[%s772_s21 + $0x20] sm:$0xff] %vm506_vm0, %v502_v25  ;;  %v503_v10 = vmax.f32 %v495_v26, 0.0  ;;  %v489_v30 = vadd.f32 %v738_v23, %v474_v27 }
  0x22   : > { %v496_v31 = vadd.f32 %v488_v28, %v441_v8 }
  0x23   : > { %512 = vst.msk [vmem:[%s772_s21 + $0x28] sm:$0xff] %vm506_vm0, %v503_v10  ;;  %v497_v13 = vadd.f32 %v489_v30, %v442_v29 }
  0x24   : > { %v504_v32 = vmax.f32 %v496_v31, 0.0 }
  0x25   : > { %v505_v33 = vmax.f32 %v497_v13, 0.0 }
  0x26   : > { %513 = vst.msk [vmem:[%s772_s21 + $0x30] sm:$0xff] %vm506_vm0, %v504_v32 }
  0x27   : > { %514 = vst.msk [vmem:[%s772_s21 + $0x38] sm:$0xff] %vm506_vm0, %v505_v33 }
  0x28 PF: > { %s20_s13 = sadd.s32 1, %s616_s13  }
  0x29   : > { %p17_p4 = scmp.ge.s32.totalorder %s20_s13, 4  }
  0x2b   :  { %19 = sbr.rel (!%p17_p4) target bundleno = 1 (0x1), region = 93 }

// kernel: basic_block_dubin_forward.5
= control target key start
LH: loop header
LB: loop body
LE: loop exit
PB: predicated region body
PF: predicated region fallthrough
CT: control target
= control target key end

     0   :  { %s2112_s27 = smov 0   ;;  %s2114_s28 = smov 0   ;;  %s3014_s0 = inlined_call_operand.vmem [shape: f32[2,8,8,128], index: 0, kind: input, shape index: {}]   ;;  %s3015_s1 = inlined_call_operand.vmem [shape: f32[2,1,128], index: 1, kind: input, shape index: {}]   ;;  %s3016_s2 = inlined_call_operand.vmem [shape: f32[2,1,128], index: 2, kind: input, shape index: {}]   ;;  %s3017_s3 = inlined_call_operand.vmem [shape: f32[1,128], index: 3, kind: input, shape index: {}]   ;;  %s3018_s4 = inlined_call_operand.vmem [shape: f32[1,128], index: 4, kind: input, shape index: {}]   ;;  %s3019_s5 = inlined_call_operand.vmem [shape: f32[1152,128], index: 5, kind: input, shape index: {}]   ;;  %s3020_s6 = inlined_call_operand.vmem [shape: f32[2,8,8,128], index: 6, kind: output, shape index: {0}]   ;;  %s3021_s7 = inlined_call_operand.vmem [shape: f32[2,1,128], index: 7, kind: output, shape index: {1}]   ;;  %s3022_s8 = inlined_call_operand.vmem [shape: f32[2,1,128], index: 8, kind: output, shape index: {2}]  }
   0x1   :  { %s2116_s29 = smov 0  }
   0x2 LB: > { %s28_s30 = sadd.s32 1, %s2060_s28  ;;  %p1492_p0 = scmp.ge.s32.totalorder %s2064_s29, 1  ;;  %s2064_s29 = sphi %s2116_s29, %s19_s29   ;;  %s2060_s28 = sphi %s2114_s28, %s3026_s28   ;;  %s2056_s27 = sphi %s2112_s27, %s3025_s27  }
   0x3   : > { %p29_p1 = scmp.ge.s32.totalorder %s28_s30, 2  ;;  %p310_p2 = scmp.lt.s32.totalorder %s2064_s29, 3 }
   0x5   : > { %s3028_s30 = smov (%p29_p1, %s28_s30), 0  ;;  %p311_p3 = pnand %p1492_p0, %p310_p2 }
   0x6   : > { %v609_v0 = vld [vmem:[%s3019_s5 + $0x80] sm:$0xff] (!%p311_p3)  ;;  %v610_v1 = vld [vmem:[%s3019_s5 + $0x88] sm:$0xff] (!%p311_p3)  ;;  %vm482_vm0 = vcmask (!%p311_p3), 1040384   ;;  %v2066_v7 = vmov (!%p311_p3), 0.0   ;;  %v611_v13 = vld [vmem:[%s3019_s5 + $0x90] sm:$0xff] (!%p311_p3)  ;;  %vm517_vm1 = vcmask (!%p311_p3), 1046528   ;;  %v420_v63 = vlaneseq (!%p311_p3) }
   0x7   : > { %314 = sbr.rel (%p311_p3) target bundleno = 354 (0x162), region = 44  ;;  %v641_v2 = vld [vmem:[%s3019_s5 + $0x180] sm:$0xff] (!%p311_p3)  ;;  %v1841_v3 = vpack.c.bf16 (!%p311_p3), %v610_v1, %v609_v0  ;;  %v642_v4 = vld [vmem:[%s3019_s5 + $0x188] sm:$0xff] (!%p311_p3)  ;;  %v2150_v8 = vrot.slane (!%p311_p3), %v2066_v7, 7  ;;  %v612_v15 = vld [vmem:[%s3019_s5 + $0x98] sm:$0xff] (!%p311_p3)  ;;  %p369_p4 = scmp.lt.s32.totalorder (!%p311_p3), %s2056_s27, 1 }
   0x8   : > { %v593_v5 = vld [vmem:[%s3019_s5] sm:$0xff] (!%p311_p3)  ;;  %v594_v6 = vld [vmem:[%s3019_s5 + $0x8] sm:$0xff] (!%p311_p3)  ;;  %v1873_v9 = vpack.c.bf16 (!%p311_p3), %v642_v4, %v641_v2  ;;  %v643_v16 = vld [vmem:[%s3019_s5 + $0x190] sm:$0xff] (!%p311_p3)  ;;  %v1845_v20 = vpack.c.bf16 (!%p311_p3), %v612_v15, %v611_v13  ;;  %v2295_v13 = vshrl.u32 (!%p311_p3), %v420_v63, 7  ;;  %vm550_vm3 = vcmask (!%p311_p3), 1045504  }
   0x9   : > { %v1843_v10 = vpack.c.bf16 (!%p311_p3), %v594_v6, %v593_v5  ;;  %v625_v11 = vld [vmem:[%s3019_s5 + $0x100] sm:$0xff] (!%p311_p3)  ;;  %v626_v12 = vld [vmem:[%s3019_s5 + $0x108] sm:$0xff] (!%p311_p3)  ;;  %1842 = vmatprep.subr.bf16.mxu0 (!%p311_p3), %v1841_v3  ;;  %v644_v17 = vld [vmem:[%s3019_s5 + $0x198] sm:$0xff] (!%p311_p3)  ;;  %v2172_v18 = vsel (!%p311_p3), %vm482_vm0, 0.0, %v2150_v8  ;;  %v2176_v19 = vsel (!%p311_p3), %vm482_vm0, %v2150_v8, 0.0 }
   0xa   : > { %v1875_v14 = vpack.c.bf16 (!%p311_p3), %v626_v12, %v625_v11  ;;  %1874 = vmatprep.subr.bf16.mxu1 (!%p311_p3), %v1873_v9  ;;  %v1877_v21 = vpack.c.bf16 (!%p311_p3), %v644_v17, %v643_v16  ;;  %v595_v22 = vld [vmem:[%s3019_s5 + $0x10] sm:$0xff] (!%p311_p3)  ;;  %v596_v23 = vld [vmem:[%s3019_s5 + $0x18] sm:$0xff] (!%p311_p3)  ;;  %v518_v25 = vrot.slane (!%p311_p3), %v2172_v18, 1  ;;  %v519_v26 = vrot.slane (!%p311_p3), %v2176_v19, 1  ;;  %v613_v29 = vld [vmem:[%s3019_s5 + $0xa0] sm:$0xff] (!%p311_p3) }
   0xb   : > { %1844 = vmatpush3.bf16.msra.mxu0 (!%p311_p3), %v1843_v10  ;;  %v627_v24 = vld [vmem:[%s3019_s5 + $0x110] sm:$0xff] (!%p311_p3)  ;;  %v1847_v27 = vpack.c.bf16 (!%p311_p3), %v596_v23, %v595_v22  ;;  %v628_v28 = vld [vmem:[%s3019_s5 + $0x118] sm:$0xff] (!%p311_p3)  ;;  %v614_v30 = vld [vmem:[%s3019_s5 + $0xa8] sm:$0xff] (!%p311_p3) }
   0xc   : > { %1876 = vmatpush3.bf16.msra.mxu1 (!%p311_p3), %v1875_v14  ;;  %1846 = vmatprep.subr.bf16.mxu0 (!%p311_p3), %v1845_v20  ;;  %v1879_v31 = vpack.c.bf16 (!%p311_p3), %v628_v28, %v627_v24  ;;  %v1849_v32 = vpack.c.bf16 (!%p311_p3), %v614_v30, %v613_v29  ;;  %v645_v33 = vld [vmem:[%s3019_s5 + $0x1a0] sm:$0xff] (!%p311_p3)  ;;  %v646_v34 = vld [vmem:[%s3019_s5 + $0x1a8] sm:$0xff] (!%p311_p3)  ;;  %v2208_v36 = vsel (!%p311_p3), %vm517_vm1, %v518_v25, %v519_v26  ;;  %v615_v42 = vld [vmem:[%s3019_s5 + $0xb0] sm:$0xff] (!%p311_p3) }
   0xd   : > { %1878 = vmatprep.subr.bf16.mxu1 (!%p311_p3), %v1877_v21  ;;  %v597_v35 = vld [vmem:[%s3019_s5 + $0x20] sm:$0xff] (!%p311_p3)  ;;  %v1881_v37 = vpack.c.bf16 (!%p311_p3), %v646_v34, %v645_v33  ;;  %v598_v38 = vld [vmem:[%s3019_s5 + $0x28] sm:$0xff] (!%p311_p3)  ;;  %801 = vmatprep.mubr.f32.mxu0 (!%p311_p3), %v2208_v36  ;;  %v616_v43 = vld [vmem:[%s3019_s5 + $0xb8] sm:$0xff] (!%p311_p3) }
   0xe   : > { %v629_v39 = vld [vmem:[%s3019_s5 + $0x120] sm:$0xff]  ;;  %v630_v40 = vld [vmem:[%s3019_s5 + $0x128] sm:$0xff]  ;;  %v1851_v41 = vpack.c.bf16 %v598_v38, %v597_v35  ;;  %v647_v44 = vld [vmem:[%s3019_s5 + $0x1b0] sm:$0xff]  ;;  %v1853_v46 = vpack.c.bf16 %v616_v43, %v615_v42  ;;  %s3030_s27 = smov (!%p369_p4, %s2056_s27), 1 }
   0xf   : > { %1848 = vmatpush3.bf16.msra.mxu0 %v1847_v27  ;;  %v1883_v45 = vpack.c.bf16 %v630_v40, %v629_v39  ;;  %v648_v47 = vld [vmem:[%s3019_s5 + $0x1b8] sm:$0xff]  ;;  %v599_v48 = vld [vmem:[%s3019_s5 + $0x30] sm:$0xff]  ;;  %v617_v53 = vld [vmem:[%s3019_s5 + $0xc0] sm:$0xff]  ;;  %s1547_s19 = sshll.u32 %s3030_s27, 6  ;;  %s379_s22 = scalar_lea.vmem %s3016_s2, %s3030_s27 }
  0x10   : > { %1880 = vmatpush3.bf16.msra.mxu1 %v1879_v31  ;;  %1850 = vmatprep.subr.bf16.mxu0 %v1849_v32  ;;  %v600_v49 = vld [vmem:[%s3019_s5 + $0x38] sm:$0xff]  ;;  %v1885_v50 = vpack.c.bf16 %v648_v47, %v647_v44  ;;  %v631_v51 = vld [vmem:[%s3019_s5 + $0x130] sm:$0xff]  ;;  %v618_v54 = vld [vmem:[%s3019_s5 + $0xc8] sm:$0xff]  ;;  %s376_s13 = scalar_lea.vmem %s3015_s1, %s3030_s27  ;;  %s2344_s10 = scalar_lea.vmem %s3014_s0, %s1547_s19  ;;  %v422_v32 = vsub.s32 0, %v2295_v13 }
  0x11   : > { %1882 = vmatprep.subr.bf16.mxu1 %v1881_v37  ;;  %v632_v52 = vld [vmem:[%s3019_s5 + $0x138] sm:$0xff]  ;;  %v649_v55 = vld [vmem:[%s3019_s5 + $0x1c0] sm:$0xff]  ;;  %v650_v56 = vld [vmem:[%s3019_s5 + $0x1c8] sm:$0xff]  ;;  %v1855_v57 = vpack.c.bf16 %v600_v49, %v599_v48  ;;  %v1857_v59 = vpack.c.bf16 %v618_v54, %v617_v53  ;;  %s2987_s26 = scalar_lea.vmem %s3020_s6, %s1547_s19  ;;  %s397_s11 = scalar_lea.vmem %s3021_s7, %s3030_s27 }
  0x12   : > { %v1887_v58 = vpack.c.bf16 %v632_v52, %v631_v51  ;;  %v601_v60 = vld [vmem:[%s3019_s5 + $0x40] sm:$0xff]  ;;  %v602_v61 = vld [vmem:[%s3019_s5 + $0x48] sm:$0xff]  ;;  %v1889_v0 = vpack.c.bf16 %v650_v56, %v649_v55  ;;  %v619_v2 = vld [vmem:[%s3019_s5 + $0xd0] sm:$0xff]  ;;  %v551_v55 = vrot.slane %v2172_v18, 2  ;;  %s403_s15 = scalar_lea.vmem %s3022_s8, %s3030_s27 }
  0x13   : > { %1852 = vmatpush3.bf16.msra.mxu0 %v1851_v41  ;;  %v633_v62 = vld [vmem:[%s3019_s5 + $0x140] sm:$0xff]  ;;  %v634_v1 = vld [vmem:[%s3019_s5 + $0x148] sm:$0xff]  ;;  %v620_v3 = vld [vmem:[%s3019_s5 + $0xd8] sm:$0xff]  ;;  %v1859_v6 = vpack.c.bf16 %v602_v61, %v601_v60  ;;  %v552_v61 = vrot.slane %v2176_v19, 2 }
  0x14   : > { %1884 = vmatpush3.bf16.msra.mxu1 %v1883_v45  ;;  %1854 = vmatprep.subr.bf16.mxu0 %v1853_v46  ;;  %v651_v4 = vld [vmem:[%s3019_s5 + $0x1d0] sm:$0xff]  ;;  %v652_v5 = vld [vmem:[%s3019_s5 + $0x1d8] sm:$0xff]  ;;  %v1891_v7 = vpack.c.bf16 %v634_v1, %v633_v62  ;;  %v1861_v9 = vpack.c.bf16 %v620_v3, %v619_v2  ;;  %v621_v16 = vld [vmem:[%s3019_s5 + $0xe0] sm:$0xff] }
  0x15   : > { %1886 = vmatprep.subr.bf16.mxu1 %v1885_v50  ;;  %v603_v10 = vld [vmem:[%s3019_s5 + $0x50] sm:$0xff]  ;;  %v604_v11 = vld [vmem:[%s3019_s5 + $0x58] sm:$0xff]  ;;  %v1893_v14 = vpack.c.bf16 %v652_v5, %v651_v4  ;;  %v622_v17 = vld [vmem:[%s3019_s5 + $0xe8] sm:$0xff] }
  0x16   : > { %v635_v12 = vld [vmem:[%s3019_s5 + $0x150] sm:$0xff]  ;;  %v636_v15 = vld [vmem:[%s3019_s5 + $0x158] sm:$0xff]  ;;  %v653_v20 = vld [vmem:[%s3019_s5 + $0x1e0] sm:$0xff]  ;;  %v1863_v23 = vpack.c.bf16 %v604_v11, %v603_v10  ;;  %v1865_v28 = vpack.c.bf16 %v622_v17, %v621_v16 }
  0x17   : > { %1856 = vmatpush3.bf16.msra.mxu0 %v1855_v57  ;;  %v654_v21 = vld [vmem:[%s3019_s5 + $0x1e8] sm:$0xff]  ;;  %v605_v22 = vld [vmem:[%s3019_s5 + $0x60] sm:$0xff]  ;;  %v1895_v27 = vpack.c.bf16 %v636_v15, %v635_v12  ;;  %v623_v29 = vld [vmem:[%s3019_s5 + $0xf0] sm:$0xff] }
  0x18   : > { %1888 = vmatpush3.bf16.msra.mxu1 %v1887_v58  ;;  %1858 = vmatprep.subr.bf16.mxu0 %v1857_v59  ;;  %v606_v24 = vld [vmem:[%s3019_s5 + $0x68] sm:$0xff]  ;;  %v637_v25 = vld [vmem:[%s3019_s5 + $0x160] sm:$0xff]  ;;  %v624_v30 = vld [vmem:[%s3019_s5 + $0xf8] sm:$0xff]  ;;  %v1897_v33 = vpack.c.bf16 %v654_v21, %v653_v20  ;;  %v2459_v21 = vsel %vm550_vm3, %v551_v55, %v552_v61 }
  0x19   : > { %1890 = vmatprep.subr.bf16.mxu1 %v1889_v0  ;;  %v638_v26 = vld [vmem:[%s3019_s5 + $0x168] sm:$0xff]  ;;  %v412_v31 = vld [vmem:[%s379_s22] sm:$0x1]  ;;  %v655_v34 = vld [vmem:[%s3019_s5 + $0x1f0] sm:$0xff]  ;;  %v1867_v42 = vpack.c.bf16 %v606_v24, %v605_v22  ;;  %v1869_v48 = vpack.c.bf16 %v624_v30, %v623_v29 }
  0x1a   : > { %v413_v35 = vld [vmem:[%s3017_s3] sm:$0x1]  ;;  %v656_v38 = vld [vmem:[%s3019_s5 + $0x1f8] sm:$0xff]  ;;  %v607_v39 = vld [vmem:[%s3019_s5 + $0x70] sm:$0xff]  ;;  %v1899_v43 = vpack.c.bf16 %v638_v26, %v637_v25 }
  0x1b   : > { %1860 = vmatpush3.bf16.msra.mxu0 %v1859_v6  ;;  %v416_v37 = vld [vmem:[%s376_s13] sm:$0x1]  ;;  %v608_v40 = vld [vmem:[%s3019_s5 + $0x78] sm:$0xff]  ;;  %v414_v41 = vmul.f32 %v413_v35, %v412_v31  ;;  %v639_v44 = vld [vmem:[%s3019_s5 + $0x170] sm:$0xff]  ;;  %v1901_v54 = vpack.c.bf16 %v656_v38, %v655_v34 }
  0x1c   : > { %1892 = vmatpush3.bf16.msra.mxu1 %v1891_v7  ;;  %1862 = vmatprep.subr.bf16.mxu0 %v1861_v9  ;;  %v640_v45 = vld [vmem:[%s3019_s5 + $0x178] sm:$0xff]  ;;  %v404_v46 = vld [vmem:[%s2344_s10] sm:$0xff]  ;;  %vm2375_vm2 = vmneg %vm482_vm0  ;;  %v1871_v2 = vpack.c.bf16 %v608_v40, %v607_v39 }
  0x1d   : > { %1894 = vmatprep.subr.bf16.mxu1 %v1893_v14  ;;  %v415_v47 = vld [vmem:[%s3018_s4] sm:$0x1]  ;;  %v417_v49 = vmul.f32 %v416_v37, %v414_v41  ;;  %v2372_v50 = vrot.slane %v414_v41, %v422_v32  ;;  %v674_v53 = vld [vmem:[%s3019_s5 + $0x288] sm:$0xff]  ;;  %v675_v1 = vld [vmem:[%s3019_s5 + $0x290] sm:$0xff]  ;;  %v1903_v6 = vpack.c.bf16 %v640_v45, %v639_v44 }
  0x1e   : > { %v673_v52 = vld [vmem:[%s3019_s5 + $0x280] sm:$0xff]  ;;  %v706_v57 = vld [vmem:[%s3019_s5 + $0x388] sm:$0xff]  ;;  %v676_v3 = vld [vmem:[%s3019_s5 + $0x298] sm:$0xff] }
  0x1f   : > { %1864 = vmatpush3.bf16.msra.mxu0 %v1863_v23  ;;  %v705_v56 = vld [vmem:[%s3019_s5 + $0x380] sm:$0xff]  ;;  %v405_v58 = vld [vmem:[%s2344_s10 + $0x8] sm:$0xff]  ;;  %v418_v59 = vsub.f32 %v415_v47, %v417_v49  ;;  %v425_v60 = vmul.f32 %v2372_v50, %v404_v46  ;;  %v2421_v4 = vld [vmem:[%s3019_s5 + $0x390] sm:$0xff]  ;;  %v1905_v9 = vpack.c.bf16 %v674_v53, %v673_v52 }
  0x20   : > { %1896 = vmatpush3.bf16.msra.mxu1 %v1895_v27  ;;  %1866 = vmatprep.subr.bf16.mxu0 %v1865_v28  ;;  %v657_v62 = vld [vmem:[%s3019_s5 + $0x200] sm:$0xff]  ;;  %v658_v18 = vld [vmem:[%s3019_s5 + $0x208] sm:$0xff]  ;;  %v426_v19 = vmul.f32 %v2372_v50, %v405_v58  ;;  %v2426_v5 = vld [vmem:[%s3019_s5 + $0x398] sm:$0xff]  ;;  %v1937_v13 = vpack.c.bf16 %v706_v57, %v705_v56  ;;  %v1909_v28 = vpack.c.bf16 %v676_v3, %v675_v1 }
  0x21   : > { %1898 = vmatprep.subr.bf16.mxu1 %v1897_v33  ;;  %v2404_v63 = vld [vmem:[%s3019_s5 + $0x300] sm:$0xff]  ;;  %v2409_v0 = vld [vmem:[%s3019_s5 + $0x308] sm:$0xff]  ;;  %v2428_v7 = vrot.slane %v418_v59, %v422_v32  ;;  %v2433_v10 = vld [vmem:[%s3019_s5 + $0x210] sm:$0xff]  ;;  %v1907_v26 = vpack.c.bf16 %v658_v18, %v657_v62  ;;  %v1941_v35 = vpack.c.bf16 %v2426_v5, %v2421_v4 }
  0x22   : > { %v2438_v11 = vld [vmem:[%s3019_s5 + $0x218] sm:$0xff]  ;;  %v406_v12 = vld [vmem:[%s2344_s10 + $0x10] sm:$0xff]  ;;  %v2455_v17 = vld [vmem:[%s3019_s5 + $0x2a0] sm:$0xff]  ;;  %v1939_v27 = vpack.c.bf16 %v2409_v0, %v2404_v63 }
  0x23   : > { %1868 = vmatpush3.bf16.msra.mxu0 %v1867_v42  ;;  %v2444_v14 = vld [vmem:[%s3019_s5 + $0x310] sm:$0xff]  ;;  %v2449_v15 = vld [vmem:[%s3019_s5 + $0x318] sm:$0xff]  ;;  %v427_v16 = vmul.f32 %v2372_v50, %v406_v12  ;;  %v439_v20 = vadd.f32 %v2428_v7, %v425_v60  ;;  %v440_v22 = vadd.f32 %v2428_v7, %v426_v19  ;;  %v2465_v23 = vld [vmem:[%s3019_s5 + $0x2a8] sm:$0xff]  ;;  %v1911_v40 = vpack.c.bf16 %v2438_v11, %v2433_v10 }
  0x24   : > { %1900 = vmatpush3.bf16.msra.mxu1 %v1899_v43  ;;  %1870 = vmatprep.subr.bf16.mxu0 %v1869_v48  ;;  %v2470_v24 = vld [vmem:[%s3019_s5 + $0x3a0] sm:$0xff]  ;;  %v2475_v25 = vld [vmem:[%s3019_s5 + $0x3a8] sm:$0xff]  ;;  %v407_v32 = vld [vmem:[%s2344_s10 + $0x18] sm:$0xff]  ;;  %v1943_v41 = vpack.c.bf16 %v2449_v15, %v2444_v14  ;;  %v1913_v43 = vpack.c.bf16 %v2465_v23, %v2455_v17 }
  0x25   : > { %1902 = vmatprep.subr.bf16.mxu1 %v1901_v54  ;;  %v441_v29 = vadd.f32 %v2428_v7, %v427_v16  ;;  %v2483_v30 = vld [vmem:[%s3019_s5 + $0x220] sm:$0xff]  ;;  %v2488_v31 = vld [vmem:[%s3019_s5 + $0x228] sm:$0xff]  ;;  %v447_v33 = vmax.f32 %v439_v20, 0.0  ;;  %v448_v34 = vmax.f32 %v440_v22, 0.0  ;;  %v428_v39 = vmul.f32 %v2372_v50, %v407_v32  ;;  %v2537_v59 = vld [vmem:[%s3019_s5 + $0x2b0] sm:$0xff] }
  0x26   : > { %v2496_v37 = vld [vmem:[%s3019_s5 + $0x320] sm:$0xff]  ;;  %v2501_v38 = vld [vmem:[%s3019_s5 + $0x328] sm:$0xff]  ;;  %v1945_v46 = vpack.c.bf16 %v2475_v25, %v2470_v24  ;;  %v1915_v47 = vpack.c.bf16 %v2488_v31, %v2483_v30  ;;  %v2542_v60 = vld [vmem:[%s3019_s5 + $0x2b8] sm:$0xff] }
  0x27   : > { %1872 = vmatpush3.bf16.msra.mxu0 %v1871_v2  ;;  %v449_v42 = vmax.f32 %v441_v29, 0.0  ;;  %v465_v44 = vrot.slane %v447_v33, 7  ;;  %v2513_v45 = vrot.slane %v448_v34, 7  ;;  %v408_v48 = vld [vmem:[%s2344_s10 + $0x20] sm:$0xff]  ;;  %v1947_v52 = vpack.c.bf16 %v2501_v38, %v2496_v37  ;;  %v2548_v0 = vld [vmem:[%s3019_s5 + $0x3b0] sm:$0xff]  ;;  %v2553_v19 = vld [vmem:[%s3019_s5 + $0x3b8] sm:$0xff] }
  0x28   : > { %1904 = vmatpush3.bf16.msra.mxu1 %v1903_v6  ;;  %1906 = vmatprep.subr.bf16.mxu0 %v1905_v9  ;;  %v442_v53 = vadd.f32 %v2428_v7, %v428_v39  ;;  %v429_v54 = vmul.f32 %v2372_v50, %v408_v48  ;;  %v2561_v5 = vld [vmem:[%s3019_s5 + $0x230] sm:$0xff]  ;;  %v2566_v6 = vld [vmem:[%s3019_s5 + $0x238] sm:$0xff]  ;;  %v2591_v17 = vld [vmem:[%s3019_s5 + $0x2c0] sm:$0xff] }
  0x29   : > { %1938 = vmatprep.subr.bf16.mxu1 %v1937_v13  ;;  %v2520_v49 = vrot.slane %v449_v42, 7  ;;  %1514 = vmatprep.mubr.msk.f32.mxu1 %vm2375_vm2, %v465_v44  ;;  %v484_v55 = vsel %vm482_vm0, 0.0, %v465_v44  ;;  %v493_v56 = vsel %vm482_vm0, %v465_v44, 0.0  ;;  %v485_v57 = vsel %vm482_vm0, 0.0, %v2513_v45  ;;  %v2581_v13 = vld [vmem:[%s3019_s5 + $0x330] sm:$0xff]  ;;  %v2586_v16 = vld [vmem:[%s3019_s5 + $0x338] sm:$0xff] }
  0x2a   : > { %1498 = vmatmul.mubr.msk.f32.vlgmr.msra.gmra.mrb[0].mxu0 %vm2375_vm2, %v2150_v8  ;;  %v494_v58 = vsel %vm482_vm0, %v2513_v45, 0.0  ;;  %v521_v61 = vrot.slane %v484_v55, 1  ;;  %v522_v62 = vrot.slane %v493_v56, 1  ;;  %v554_v18 = vrot.slane %v484_v55, 2  ;;  %v2612_v29 = vld [vmem:[%s3019_s5 + $0x3c8] sm:$0xff]  ;;  %v2621_v39 = vld [vmem:[%s3019_s5 + $0x240] sm:$0xff] }
  0x2b   : > { %1908 = vmatpush3.bf16.msra.mxu0 %v1907_v26  ;;  %907 = vmatmul.mubr.f32.vlgmr.msra.gmra.mrb[0].mxu1 %v2459_v21  ;;  %v555_v63 = vrot.slane %v493_v56, 2  ;;  %v524_v1 = vrot.slane %v485_v57, 1  ;;  %v525_v2 = vrot.slane %v494_v58, 1  ;;  %v557_v3 = vrot.slane %v485_v57, 2  ;;  %v409_v42 = vld [vmem:[%s2344_s10 + $0x28] sm:$0xff]  ;;  %v410_v55 = vld [vmem:[%s2344_s10 + $0x30] sm:$0xff] }
  0x2c   : > { %1910 = vmatprep.subr.bf16.mxu0 %v1909_v28  ;;  %1940 = vmatpush3.bf16.msra.mxu1 %v1939_v27  ;;  %v558_v4 = vrot.slane %v494_v58, 2  ;;  %v2569_v9 = vsel %vm517_vm1, %v521_v61, %v522_v62  ;;  %v486_v11 = vsel %vm482_vm0, 0.0, %v2520_v49  ;;  %v495_v12 = vsel %vm482_vm0, %v2520_v49, 0.0  ;;  %v2602_v27 = vld [vmem:[%s3019_s5 + $0x2c8] sm:$0xff]  ;;  %v2607_v28 = vld [vmem:[%s3019_s5 + $0x3c0] sm:$0xff] }
  0x2d   : > { %1516 = vmatprep.mubr.msk.f32.mxu1 %vm2375_vm2, %v2513_v45  ;;  %v2572_v10 = vsel %vm550_vm3, %v554_v18, %v555_v63  ;;  %1942 = vmatprep.subr.bf16.mxu1 %v1941_v35  ;;  %v2595_v20 = vsel %vm517_vm1, %v524_v1, %v525_v2  ;;  %v527_v22 = vrot.slane %v486_v11, 1  ;;  %v528_v23 = vrot.slane %v495_v12, 1  ;;  %v2680_v57 = vld [vmem:[%s3019_s5 + $0x340] sm:$0xff]  ;;  %v698_v58 = vld [vmem:[%s3019_s5 + $0x348] sm:$0xff]  ;;  %v683_v18 = vld [vmem:[%s3019_s5 + $0x2d0] sm:$0xff] }
  0x2e   : > { %806 = vmatprep.mubr.f32.mxu0 %v2569_v9  ;;  %v1917_v26 = vpack.c.bf16 %v2542_v60, %v2537_v59  ;;  %v450_v32 = vmax.f32 %v442_v53, 0.0  ;;  %v560_v33 = vrot.slane %v486_v11, 2  ;;  %v561_v34 = vrot.slane %v495_v12, 2  ;;  %v684_v63 = vld [vmem:[%s3019_s5 + $0x2d8] sm:$0xff]  ;;  %v667_v1 = vld [vmem:[%s3019_s5 + $0x250] sm:$0xff] }
  0x2f   : > { %1912 = vmatpush3.bf16.msra.mxu0 %v1911_v40  ;;  %912 = vmatmul.mubr.f32.gmra.mrb[2].mxu1 %v2572_v10  ;;  %v443_v35 = vadd.f32 %v2428_v7, %v429_v54  ;;  %v2626_v40 = vld [vmem:[%s3019_s5 + $0x248] sm:$0xff]  ;;  %v1919_v48 = vpack.c.bf16 %v2566_v6, %v2561_v5  ;;  %v2647_v14 = vsel %vm517_vm1, %v527_v22, %v528_v23  ;;  %v668_v11 = vld [vmem:[%s3019_s5 + $0x258] sm:$0xff]  ;;  %v2723_v12 = vld [vmem:[%s3019_s5 + $0x350] sm:$0xff] }
  0x30   : > { %1914 = vmatprep.subr.bf16.mxu0 %v1913_v43  ;;  %1500 = vmatmul.mubr.msk.f32.gmra.mrb[2].mxu0 %vm2375_vm2, %v465_v44  ;;  %v2634_v43 = vsel %vm550_vm3, %v557_v3, %v558_v4  ;;  %v1949_v44 = vpack.c.bf16 %v2553_v19, %v2548_v0  ;;  %v2649_v15 = vrot.slane %v450_v32, 7  ;;  %v1921_v54 = vpack.c.bf16 %v2602_v27, %v2591_v17  ;;  %v715_v0 = vld [vmem:[%s3019_s5 + $0x3d0] sm:$0xff]  ;;  %v716_v19 = vld [vmem:[%s3019_s5 + $0x3d8] sm:$0xff]  ;;  %v2743_v27 = vld [vmem:[%s3019_s5 + $0x2e8] sm:$0xff] }
  0x31   : > { %1944 = vmatpush3.bf16.msra.mxu1 %v1943_v41  ;;  %811 = vmatprep.mubr.f32.mxu0 %v2595_v20  ;;  %v1951_v41 = vpack.c.bf16 %v2586_v16, %v2581_v13  ;;  %v451_v53 = vmax.f32 %v443_v35, 0.0  ;;  %v1953_v24 = vpack.c.bf16 %v2612_v29, %v2607_v28  ;;  %v1923_v25 = vpack.c.bf16 %v2626_v40, %v2621_v39  ;;  %v2728_v13 = vld [vmem:[%s3019_s5 + $0x358] sm:$0xff] }
  0x32   : > { %1518 = vmatprep.mubr.msk.f32.mxu1 %vm2375_vm2, %v2520_v49  ;;  %1946 = vmatprep.subr.bf16.mxu1 %v1945_v46  ;;  %v430_v46 = vmul.f32 %v2372_v50, %v409_v42  ;;  %v2669_v30 = vsel %vm550_vm3, %v560_v33, %v561_v34  ;;  %v487_v31 = vsel %vm482_vm0, 0.0, %v2649_v15  ;;  %v431_v2 = vmul.f32 %v2372_v50, %v410_v55  ;;  %v411_v28 = vld [vmem:[%s2344_s10 + $0x38] sm:$0xff]  ;;  %v670_v55 = vld [vmem:[%s3019_s5 + $0x268] sm:$0xff] }
  0x33   : > { %1916 = vmatpush3.bf16.msra.mxu0 %v1915_v47  ;;  %917 = vmatmul.mubr.f32.gmra.mrb[4].mxu1 %v2634_v43  ;;  %v496_v47 = vsel %vm482_vm0, %v2649_v15, 0.0  ;;  %v2675_v56 = vrot.slane %v451_v53, 7  ;;  %v530_v59 = vrot.slane %v487_v31, 1  ;;  %v563_v61 = vrot.slane %v487_v31, 2 }
  0x34   : > { %1502 = vmatmul.mubr.msk.f32.gmra.mrb[4].mxu0 %vm2375_vm2, %v2513_v45  ;;  %v531_v60 = vrot.slane %v496_v47, 1  ;;  %v564_v62 = vrot.slane %v496_v47, 2  ;;  %1520 = vmatprep.mubr.msk.f32.mxu1 %vm2375_vm2, %v2649_v15  ;;  %v1955_v4 = vpack.c.bf16 %v698_v58, %v2680_v57  ;;  %v445_v23 = vadd.f32 %v2428_v7, %v431_v2 }
  0x35   : > { %1948 = vmatpush3.bf16.msra.mxu1 %v1947_v52  ;;  %816 = vmatprep.mubr.f32.mxu0 %v2647_v14  ;;  %v488_v37 = vsel %vm482_vm0, 0.0, %v2675_v56  ;;  %v497_v38 = vsel %vm482_vm0, %v2675_v56, 0.0  ;;  %v444_v52 = vadd.f32 %v2428_v7, %v430_v46  ;;  %v1925_v32 = vpack.c.bf16 %v684_v63, %v683_v18 }
  0x36   : > { %1918 = vmatprep.subr.bf16.mxu0 %v1917_v26  ;;  %1950 = vmatprep.subr.bf16.mxu1 %v1949_v44  ;;  %v2714_v3 = vsel %vm517_vm1, %v530_v59, %v531_v60  ;;  %v533_v5 = vrot.slane %v488_v37, 1  ;;  %v534_v6 = vrot.slane %v497_v38, 1  ;;  %v566_v17 = vrot.slane %v488_v37, 2  ;;  %v2738_v26 = vld [vmem:[%s3019_s5 + $0x2e0] sm:$0xff] }
  0x37   : > { %1920 = vmatpush3.bf16.msra.mxu0 %v1919_v48  ;;  %922 = vmatmul.mubr.f32.gmra.mrb[6].mxu1 %v2669_v30  ;;  %v452_v16 = vmax.f32 %v444_v52, 0.0  ;;  %v567_v22 = vrot.slane %v497_v38, 2  ;;  %v2748_v29 = vsel %vm550_vm3, %v563_v61, %v564_v62  ;;  %v1957_v33 = vpack.c.bf16 %v716_v19, %v715_v0  ;;  %v717_v48 = vld [vmem:[%s3019_s5 + $0x3e0] sm:$0xff]  ;;  %v702_v61 = vld [vmem:[%s3019_s5 + $0x368] sm:$0xff]  ;;  %v687_v19 = vld [vmem:[%s3019_s5 + $0x2f0] sm:$0xff] }
  0x38   : > { %1504 = vmatmul.mubr.msk.f32.gmra.mrb[6].mxu0 %vm2375_vm2, %v2520_v49  ;;  %1522 = vmatprep.mubr.msk.f32.mxu1 %vm2375_vm2, %v2675_v56  ;;  %v2754_v34 = vsel %vm517_vm1, %v533_v5, %v534_v6  ;;  %v1927_v39 = vpack.c.bf16 %v668_v11, %v667_v1  ;;  %v453_v40 = vmax.f32 %v445_v23, 0.0  ;;  %v1959_v42 = vpack.c.bf16 %v2728_v13, %v2723_v12  ;;  %v701_v60 = vld [vmem:[%s3019_s5 + $0x360] sm:$0xff]  ;;  %v688_v1 = vld [vmem:[%s3019_s5 + $0x2f8] sm:$0xff]  ;;  %v671_v5 = vld [vmem:[%s3019_s5 + $0x270] sm:$0xff] }
  0x39   : > { %1952 = vmatpush3.bf16.msra.mxu1 %v1951_v41  ;;  %821 = vmatprep.mubr.f32.mxu0 %v2714_v3  ;;  %v2756_v35 = vrot.slane %v452_v16, 7  ;;  %v1929_v44 = vpack.c.bf16 %v2743_v27, %v2738_v26  ;;  %v718_v41 = vld [vmem:[%s3019_s5 + $0x3e8] sm:$0xff]  ;;  %v432_v53 = vmul.f32 %v2372_v50, %v411_v28  ;;  %v669_v50 = vld [vmem:[%s3019_s5 + $0x260] sm:$0xff]  ;;  %v672_v6 = vld [vmem:[%s3019_s5 + $0x278] sm:$0xff]  ;;  %v1963_v12 = vpack.c.bf16 %v702_v61, %v701_v60 }
  0x3a   : > { %1922 = vmatprep.subr.bf16.mxu0 %v1921_v54  ;;  %1954 = vmatprep.subr.bf16.mxu1 %v1953_v24  ;;  %v2774_v54 = vsel %vm550_vm3, %v566_v17, %v567_v22  ;;  %v2780_v46 = vrot.slane %v453_v40, 7  ;;  %v1961_v59 = vpack.c.bf16 %v718_v41, %v717_v48  ;;  %v1931_v38 = vpack.c.bf16 %v670_v55, %v669_v50  ;;  %v703_v26 = vld [vmem:[%s3019_s5 + $0x370] sm:$0xff]  ;;  %v704_v27 = vld [vmem:[%s3019_s5 + $0x378] sm:$0xff]  ;;  %v734_v60 = vld [vmem:[%s3019_s5 + $0x468] sm:$0xff] }
  0x3b   : > { %1924 = vmatpush3.bf16.msra.mxu0 %v1923_v25  ;;  %927 = vmatmul.mubr.f32.gmra.mrb[8].mxu1 %v2748_v29  ;;  %v489_v24 = vsel %vm482_vm0, 0.0, %v2756_v35  ;;  %v498_v25 = vsel %vm482_vm0, %v2756_v35, 0.0  ;;  %v446_v63 = vadd.f32 %v2428_v7, %v432_v53  ;;  %v719_v7 = vld [vmem:[%s3019_s5 + $0x3f0] sm:$0xff]  ;;  %v1933_v23 = vpack.c.bf16 %v688_v1, %v687_v19  ;;  %v724_v55 = vld [vmem:[%s3019_s5 + $0x418] sm:$0xff] }
  0x3c   : > { %1506 = vmatmul.mubr.msk.f32.gmra.mrb[8].mxu0 %vm2375_vm2, %v2649_v15  ;;  %v536_v31 = vrot.slane %v489_v24, 1  ;;  %v537_v47 = vrot.slane %v498_v25, 1  ;;  %v569_v57 = vrot.slane %v489_v24, 2  ;;  %v570_v58 = vrot.slane %v498_v25, 2  ;;  %1524 = vmatprep.mubr.msk.f32.mxu1 %vm2375_vm2, %v2756_v35  ;;  %v723_v50 = vld [vmem:[%s3019_s5 + $0x410] sm:$0xff] }
  0x3d   : > { %1956 = vmatpush3.bf16.msra.mxu1 %v1955_v4  ;;  %826 = vmatprep.mubr.f32.mxu0 %v2754_v34  ;;  %v490_v62 = vsel %vm482_vm0, 0.0, %v2780_v46  ;;  %v499_v18 = vsel %vm482_vm0, %v2780_v46, 0.0  ;;  %v454_v2 = vmax.f32 %v446_v63, 0.0  ;;  %v720_v4 = vld [vmem:[%s3019_s5 + $0x3f8] sm:$0xff]  ;;  %v1967_v48 = vpack.c.bf16 %v704_v27, %v703_v26 }
  0x3e   : > { %1926 = vmatprep.subr.bf16.mxu0 %v1925_v32  ;;  %1958 = vmatprep.subr.bf16.mxu1 %v1957_v33  ;;  %v2804_v37 = vsel %vm517_vm1, %v536_v31, %v537_v47  ;;  %v539_v52 = vrot.slane %v490_v62, 1  ;;  %v540_v0 = vrot.slane %v499_v18, 1  ;;  %v2830_v11 = vsel %vm550_vm3, %v569_v57, %v570_v58  ;;  %v721_v33 = vld [vmem:[%s3019_s5 + $0x400] sm:$0xff]  ;;  %v726_v57 = vld [vmem:[%s3019_s5 + $0x428] sm:$0xff] }
  0x3f   : > { %1928 = vmatpush3.bf16.msra.mxu0 %v1927_v39  ;;  %932 = vmatmul.mubr.f32.gmra.mrb[10].mxu1 %v2774_v54  ;;  %v572_v13 = vrot.slane %v490_v62, 2  ;;  %v573_v16 = vrot.slane %v499_v18, 2  ;;  %v2838_v22 = vrot.slane %v454_v2, 7  ;;  %v1965_v28 = vpack.c.bf16 %v720_v4, %v719_v7  ;;  %v722_v39 = vld [vmem:[%s3019_s5 + $0x408] sm:$0xff]  ;;  %v725_v47 = vld [vmem:[%s3019_s5 + $0x420] sm:$0xff]  ;;  %v735_v62 = vld [vmem:[%s3019_s5 + $0x470] sm:$0xff] }
  0x40   : > { %1508 = vmatmul.mubr.msk.f32.gmra.mrb[10].mxu0 %vm2375_vm2, %v2675_v56  ;;  %1526 = vmatprep.mubr.msk.f32.mxu1 %vm2375_vm2, %v2780_v46  ;;  %v2836_v17 = vsel %vm517_vm1, %v539_v52, %v540_v0  ;;  %v1935_v32 = vpack.c.bf16 %v672_v6, %v671_v5  ;;  %v1969_v24 = vpack.c.bf16 %v722_v39, %v721_v33  ;;  %v730_v58 = vld [vmem:[%s3019_s5 + $0x448] sm:$0xff]  ;;  %v736_v18 = vld [vmem:[%s3019_s5 + $0x478] sm:$0xff] }
  0x41   : > { %1960 = vmatpush3.bf16.msra.mxu1 %v1959_v42  ;;  %831 = vmatprep.mubr.f32.mxu0 %v2804_v37  ;;  %v2858_v40 = vsel %vm482_vm0, 0.0, %v2838_v22  ;;  %v2862_v42 = vsel %vm482_vm0, %v2838_v22, 0.0  ;;  %v1973_v31 = vpack.c.bf16 %v724_v55, %v723_v50 }
  0x42   : > { %1930 = vmatprep.subr.bf16.mxu0 %v1929_v44  ;;  %1962 = vmatprep.subr.bf16.mxu1 %v1961_v59  ;;  %v2866_v44 = vsel %vm550_vm3, %v572_v13, %v573_v16  ;;  %v585_v41 = vrot.slane %v2858_v40, 1  ;;  %v586_v53 = vrot.slane %v2862_v42, 1  ;;  %v732_v59 = vld [vmem:[%s3019_s5 + $0x458] sm:$0xff]  ;;  %v589_v61 = vrot.slane %v2858_v40, 2 }
  0x43   : > { %1932 = vmatpush3.bf16.msra.mxu0 %v1931_v38  ;;  %937 = vmatmul.mubr.f32.gmra.mrb[12].mxu1 %v2830_v11 }
  0x44   : > { %1510 = vmatmul.mubr.msk.f32.gmra.mrb[12].mxu0 %vm2375_vm2, %v2756_v35  ;;  %1528 = vmatprep.mubr.msk.f32.mxu1 %vm2375_vm2, %v2838_v22  ;;  %v2874_v25 = vsel %vm517_vm1, %v585_v41, %v586_v53 }
  0x45   : > { %1964 = vmatpush3.bf16.msra.mxu1 %v1963_v12  ;;  %836 = vmatprep.mubr.f32.mxu0 %v2836_v17 }
  0x46   : > { %1934 = vmatprep.subr.bf16.mxu0 %v1933_v23  ;;  %1966 = vmatprep.subr.bf16.mxu1 %v1965_v28 }
  0x47   : > { %1936 = vmatpush3.bf16.msra.mxu0 %v1935_v32  ;;  %942 = vmatmul.mubr.f32.gmra.mrb[14].mxu1 %v2866_v44 }
  0x48   : > { %1512 = vmatmul.mubr.msk.f32.gmra.mrb[14].mxu0 %vm2375_vm2, %v2780_v46  ;;  %1116 = vmatprep.mubr.f32.mxu1 %v2595_v20 }
  0x49   : > { %1968 = vmatpush3.bf16.msra.mxu1 %v1967_v48  ;;  %1011 = vmatprep.mubr.f32.mxu0 %v2572_v10  ;;  %v728_v10 = vld [vmem:[%s3019_s5 + $0x438] sm:$0xff] }
  0x4a   : > { %1970 = vmatprep.subr.bf16.mxu0 %v1969_v24  ;;  %2001 = vmatprep.subr.bf16.mxu1 %v1969_v24 }
  0x4c   : > { %1012 = vmatmul.mubr.f32.vlgmr.msra.gmra.mrb[16].mxu0 %v2569_v9  ;;  %1530 = vmatmul.mubr.msk.f32.vlgmr.msra.gmra.mrb[16].mxu1 %vm2375_vm2, %v2513_v45  ;;  %v1977_v9 = vpack.c.bf16 %v726_v57, %v725_v47  ;;  %v727_v45 = vld [vmem:[%s3019_s5 + $0x430] sm:$0xff] }
  0x4d   : > { %1972 = vmatpush3.bf16.msra.mxu0 %v1969_v24  ;;  %2009 = vmatpush3.bf16.msra.mxu1 %v1969_v24 }
  0x4e   : > { %1016 = vmatprep.mubr.f32.mxu0 %v2634_v43  ;;  %1121 = vmatprep.mubr.f32.mxu1 %v2647_v14 }
  0x4f   : > { %1974 = vmatprep.subr.bf16.mxu0 %v1973_v31  ;;  %2002 = vmatprep.subr.bf16.mxu1 %v1973_v31 }
  0x50   : > { %1017 = vmatmul.mubr.f32.gmra.mrb[18].mxu0 %v2595_v20  ;;  %1532 = vmatmul.mubr.msk.f32.gmra.mrb[18].mxu1 %vm2375_vm2, %v2520_v49  ;;  %v1981_v20 = vpack.c.bf16 %v728_v10, %v727_v45  ;;  %v729_v49 = vld [vmem:[%s3019_s5 + $0x440] sm:$0xff] }
  0x51   : > { %1976 = vmatpush3.bf16.msra.mxu0 %v1973_v31  ;;  %2010 = vmatpush3.bf16.msra.mxu1 %v1973_v31 }
  0x52   : > { %1021 = vmatprep.mubr.f32.mxu0 %v2669_v30  ;;  %1126 = vmatprep.mubr.f32.mxu1 %v2714_v3 }
  0x53   : > { %1978 = vmatprep.subr.bf16.mxu0 %v1977_v9  ;;  %2003 = vmatprep.subr.bf16.mxu1 %v1977_v9 }
  0x54   : > { %1022 = vmatmul.mubr.f32.gmra.mrb[20].mxu0 %v2647_v14  ;;  %1534 = vmatmul.mubr.msk.f32.gmra.mrb[20].mxu1 %vm2375_vm2, %v2649_v15  ;;  %v1985_v14 = vpack.c.bf16 %v730_v58, %v729_v49  ;;  %v731_v15 = vld [vmem:[%s3019_s5 + $0x450] sm:$0xff] }
  0x55   : > { %1980 = vmatpush3.bf16.msra.mxu0 %v1977_v9  ;;  %2011 = vmatpush3.bf16.msra.mxu1 %v1977_v9 }
  0x56   : > { %1026 = vmatprep.mubr.f32.mxu0 %v2748_v29  ;;  %1131 = vmatprep.mubr.f32.mxu1 %v2754_v34 }
  0x57   : > { %1982 = vmatprep.subr.bf16.mxu0 %v1981_v20  ;;  %2004 = vmatprep.subr.bf16.mxu1 %v1981_v20 }
  0x58   : > { %1027 = vmatmul.mubr.f32.gmra.mrb[22].mxu0 %v2714_v3  ;;  %1536 = vmatmul.mubr.msk.f32.gmra.mrb[22].mxu1 %vm2375_vm2, %v2675_v56  ;;  %v1989_v3 = vpack.c.bf16 %v732_v59, %v731_v15  ;;  %v733_v56 = vld [vmem:[%s3019_s5 + $0x460] sm:$0xff] }
  0x59   : > { %1984 = vmatpush3.bf16.msra.mxu0 %v1981_v20  ;;  %2012 = vmatpush3.bf16.msra.mxu1 %v1981_v20 }
  0x5a   : > { %1031 = vmatprep.mubr.f32.mxu0 %v2774_v54  ;;  %1136 = vmatprep.mubr.f32.mxu1 %v2804_v37 }
  0x5b   : > { %1986 = vmatprep.subr.bf16.mxu0 %v1985_v14  ;;  %2005 = vmatprep.subr.bf16.mxu1 %v1985_v14 }
  0x5c   : > { %1032 = vmatmul.mubr.f32.gmra.mrb[24].mxu0 %v2754_v34  ;;  %1538 = vmatmul.mubr.msk.f32.gmra.mrb[24].mxu1 %vm2375_vm2, %v2756_v35  ;;  %v1993_v34 = vpack.c.bf16 %v734_v60, %v733_v56  ;;  %v590_v35 = vrot.slane %v2862_v42, 2 }
  0x5d   : > { %1988 = vmatpush3.bf16.msra.mxu0 %v1985_v14  ;;  %2013 = vmatpush3.bf16.msra.mxu1 %v1985_v14 }
  0x5e   : > { %1036 = vmatprep.mubr.f32.mxu0 %v2830_v11  ;;  %1141 = vmatprep.mubr.f32.mxu1 %v2836_v17  ;;  %v591_v63 = vsel %vm550_vm3, %v589_v61, %v590_v35 }
  0x5f   : > { %1990 = vmatprep.subr.bf16.mxu0 %v1989_v3  ;;  %2006 = vmatprep.subr.bf16.mxu1 %v1989_v3 }
  0x60   : > { %1037 = vmatmul.mubr.f32.gmra.mrb[26].mxu0 %v2804_v37  ;;  %1540 = vmatmul.mubr.msk.f32.gmra.mrb[26].mxu1 %vm2375_vm2, %v2780_v46  ;;  %v1997_v37 = vpack.c.bf16 %v736_v18, %v735_v62 }
  0x61   : > { %1992 = vmatpush3.bf16.msra.mxu0 %v1989_v3  ;;  %2014 = vmatpush3.bf16.msra.mxu1 %v1989_v3 }
  0x62   : > { %1041 = vmatprep.mubr.f32.mxu0 %v2866_v44  ;;  %1146 = vmatprep.mubr.f32.mxu1 %v2874_v25 }
  0x63   : > { %1994 = vmatprep.subr.bf16.mxu0 %v1993_v34  ;;  %2007 = vmatprep.subr.bf16.mxu1 %v1993_v34 }
  0x64   : > { %1042 = vmatmul.mubr.f32.gmra.mrb[28].mxu0 %v2836_v17  ;;  %1542 = vmatmul.mubr.msk.f32.gmra.mrb[28].mxu1 %vm2375_vm2, %v2838_v22 }
  0x65   : > { %1996 = vmatpush3.bf16.msra.mxu0 %v1993_v34  ;;  %2015 = vmatpush3.bf16.msra.mxu1 %v1993_v34 }
  0x66   : > { %1046 = vmatprep.mubr.f32.mxu0 %v591_v63  ;;  %1151 = vmatprep.mubr.f32.mxu1 %v2208_v36 }
  0x67   : > { %1998 = vmatprep.subr.bf16.mxu0 %v1997_v37  ;;  %2008 = vmatprep.subr.bf16.mxu1 %v1997_v37 }
  0x68   : > { %1047 = vmatmul.mubr.f32.gmra.mrb[30].mxu0 %v2874_v25  ;;  %1544 = vmatmul.mubr.msk.f32.gmra.mrb[30].mxu1 %vm2375_vm2, %v2150_v8 }
  0x69   : > { %2000 = vmatpush3.bf16.msra.mxu0 %v1997_v37  ;;  %2016 = vmatpush3.bf16.msra.mxu1 %v1997_v37 }
  0x6a   : > { %1829 = vmatprep.mubr.f32.mxu0 %v2634_v43  ;;  %1835 = vmatprep.mubr.f32.mxu1 %v2830_v11 }
  0x6c   : > { %1830 = vmatmul.mubr.f32.vlgmr.msra.gmra.mrb[32].mxu0 %v2669_v30  ;;  %1836 = vmatmul.mubr.f32.vlgmr.msra.gmra.mrb[32].mxu1 %v2866_v44 }
  0x6d   : > { %1832 = vmatprep.mubr.f32.mxu0 %v2748_v29  ;;  %1838 = vmatprep.mubr.f32.mxu1 %v591_v63 }
  0x70   : > { %1833 = vmatmul.mubr.f32.gmra.mrb[34].mxu0 %v2774_v54  ;;  %1839 = vmatmul.mubr.f32.gmra.mrb[34].mxu1 %v2459_v21 }
  0xfd   : > { %v1581_v36 = vpop.f32.mrb[0].mxu0 }
  0xfe   : > { %v1582_v51 = vpop.f32.mrb[1].mxu0  ;;  %v1637_v46 = vpop.f32.mrb[0].mxu1 }
  0xff   : > { %v1583_v8 = vadd.f32 %v1582_v51, %v1581_v36  ;;  %v1638_v38 = vpop.f32.mrb[1].mxu1 }
 0x100   : > { %v1639_v52 = vadd.f32 %v1638_v38, %v1637_v46 }
 0x102   : > { %v909_v43 = vadd.f32 %v1639_v52, %v1583_v8  ;;  %v1640_v19 = vpop.f32.mrb[2].mxu1 }
 0x103   : > { %v1584_v0 = vpop.f32.mrb[2].mxu0  ;;  %v1641_v30 = vpop.f32.mrb[3].mxu1 }
 0x104   : > { %v1585_v1 = vpop.f32.mrb[3].mxu0  ;;  %v1642_v2 = vadd.f32 %v1641_v30, %v1640_v19 }
 0x105   : > { %v1586_v7 = vadd.f32 %v1585_v1, %v1584_v0 }
 0x106   : > { %v1643_v5 = vpop.f32.mrb[4].mxu1 }
 0x107   : > { %v914_v4 = vadd.f32 %v1642_v2, %v1586_v7  ;;  %v1587_v29 = vpop.f32.mrb[4].mxu0  ;;  %v1644_v54 = vpop.f32.mrb[5].mxu1 }
 0x108   : > { %v1588_v6 = vpop.f32.mrb[5].mxu0  ;;  %v1645_v21 = vadd.f32 %v1644_v54, %v1643_v5 }
 0x109   : > { %v1589_v11 = vadd.f32 %v1588_v6, %v1587_v29 }
 0x10a   : > { %v1646_v16 = vpop.f32.mrb[6].mxu1 }
 0x10b   : > { %v919_v12 = vadd.f32 %v1645_v21, %v1589_v11  ;;  %v1590_v13 = vpop.f32.mrb[6].mxu0  ;;  %v1647_v22 = vpop.f32.mrb[7].mxu1 }
 0x10c   : > { %v1591_v17 = vpop.f32.mrb[7].mxu0  ;;  %v1648_v26 = vadd.f32 %v1647_v22, %v1646_v16 }
 0x10d   : > { %v1592_v23 = vadd.f32 %v1591_v17, %v1590_v13 }
 0x10e   : > { %v1649_v32 = vpop.f32.mrb[8].mxu1 }
 0x10f   : > { %v924_v27 = vadd.f32 %v1648_v26, %v1592_v23  ;;  %v1593_v28 = vpop.f32.mrb[8].mxu0  ;;  %v1650_v39 = vpop.f32.mrb[9].mxu1 }
 0x110   : > { %v1594_v33 = vpop.f32.mrb[9].mxu0  ;;  %v1651_v42 = vadd.f32 %v1650_v39, %v1649_v32 }
 0x111   : > { %v1595_v40 = vadd.f32 %v1594_v33, %v1593_v28 }
 0x112   : > { %v1652_v41 = vpop.f32.mrb[10].mxu1 }
 0x113   : > { %v929_v44 = vadd.f32 %v1651_v42, %v1595_v40  ;;  %v1596_v48 = vpop.f32.mrb[10].mxu0  ;;  %v1653_v24 = vpop.f32.mrb[11].mxu1 }
 0x114   : > { %v1597_v53 = vpop.f32.mrb[11].mxu0  ;;  %v1654_v50 = vadd.f32 %v1653_v24, %v1652_v41 }
 0x115   : > { %v1598_v25 = vadd.f32 %v1597_v53, %v1596_v48 }
 0x116   : > { %v1655_v47 = vpop.f32.mrb[12].mxu1 }
 0x117   : > { %v934_v55 = vadd.f32 %v1654_v50, %v1598_v25  ;;  %v1599_v31 = vpop.f32.mrb[12].mxu0  ;;  %v1656_v9 = vpop.f32.mrb[13].mxu1 }
 0x118   : > { %v1600_v57 = vpop.f32.mrb[13].mxu0  ;;  %v1657_v10 = vadd.f32 %v1656_v9, %v1655_v47 }
 0x119   : > { %v1601_v45 = vadd.f32 %v1600_v57, %v1599_v31 }
 0x11a   : > { %v1658_v58 = vpop.f32.mrb[14].mxu1 }
 0x11b   : > { %v939_v20 = vadd.f32 %v1657_v10, %v1601_v45  ;;  %v1602_v49 = vpop.f32.mrb[14].mxu0  ;;  %v1659_v15 = vpop.f32.mrb[15].mxu1 }
 0x11c   : > { %v1603_v14 = vpop.f32.mrb[15].mxu0  ;;  %v1660_v3 = vadd.f32 %v1659_v15, %v1658_v58 }
 0x11d   : > { %v1604_v59 = vadd.f32 %v1603_v14, %v1602_v49 }
 0x11f   : > { %v2979_v56 = vadd.f32 %v1660_v3, %v1604_v59  ;;  %v1693_v60 = vpop.f32.mrb[16].mxu0  ;;  %v1749_v34 = vpop.f32.mrb[16].mxu1 }
 0x120   : > { %v1694_v61 = vpop.f32.mrb[17].mxu0  ;;  %v1750_v35 = vpop.f32.mrb[17].mxu1 }
 0x121   : > { %v1695_v62 = vadd.f32 %v1694_v61, %v1693_v60  ;;  %v1751_v18 = vadd.f32 %v1750_v35, %v1749_v34 }
 0x123   : > { %v1014_v63 = vadd.f32 %v1695_v62, %v909_v43  ;;  %v1696_v37 = vpop.f32.mrb[18].mxu0  ;;  %v1752_v36 = vpop.f32.mrb[18].mxu1 }
 0x124   : > { %v1697_v51 = vpop.f32.mrb[19].mxu0  ;;  %v1753_v8 = vpop.f32.mrb[19].mxu1 }
 0x125   : > { %v1698_v46 = vadd.f32 %v1697_v51, %v1696_v37  ;;  %v1754_v38 = vadd.f32 %v1753_v8, %v1752_v36  ;;  %v1119_v52 = vadd.f32 %v1751_v18, %v1014_v63 }
 0x127   : > { %v1019_v0 = vadd.f32 %v1698_v46, %v914_v4  ;;  %v1699_v19 = vpop.f32.mrb[20].mxu0  ;;  %v1755_v1 = vpop.f32.mrb[20].mxu1 }
 0x128   : > { %v1700_v30 = vpop.f32.mrb[21].mxu0  ;;  %v1756_v7 = vpop.f32.mrb[21].mxu1 }
 0x129   : > { %v1701_v2 = vadd.f32 %v1700_v30, %v1699_v19  ;;  %v1757_v29 = vadd.f32 %v1756_v7, %v1755_v1  ;;  %v1124_v5 = vadd.f32 %v1754_v38, %v1019_v0 }
 0x12b   : > { %v1024_v6 = vadd.f32 %v1701_v2, %v919_v12  ;;  %v1702_v54 = vpop.f32.mrb[22].mxu0  ;;  %v1758_v11 = vpop.f32.mrb[22].mxu1 }
 0x12c   : > { %v1703_v21 = vpop.f32.mrb[23].mxu0  ;;  %v1759_v43 = vpop.f32.mrb[23].mxu1 }
 0x12d   : > { %v1704_v13 = vadd.f32 %v1703_v21, %v1702_v54  ;;  %v1760_v16 = vadd.f32 %v1759_v43, %v1758_v11  ;;  %v1129_v17 = vadd.f32 %v1757_v29, %v1024_v6 }
 0x12f   : > { %v1029_v22 = vadd.f32 %v1704_v13, %v924_v27  ;;  %v1705_v23 = vpop.f32.mrb[24].mxu0  ;;  %v1761_v26 = vpop.f32.mrb[24].mxu1 }
 0x130   : > { %v1706_v28 = vpop.f32.mrb[25].mxu0  ;;  %v1762_v4 = vpop.f32.mrb[25].mxu1 }
 0x131   : > { %v1707_v32 = vadd.f32 %v1706_v28, %v1705_v23  ;;  %v1763_v33 = vadd.f32 %v1762_v4, %v1761_v26  ;;  %v1134_v39 = vadd.f32 %v1760_v16, %v1029_v22 }
 0x133   : > { %v1034_v40 = vadd.f32 %v1707_v32, %v929_v44  ;;  %v1708_v42 = vpop.f32.mrb[26].mxu0  ;;  %v1764_v48 = vpop.f32.mrb[26].mxu1 }
 0x134   : > { %v1709_v41 = vpop.f32.mrb[27].mxu0  ;;  %v1765_v12 = vpop.f32.mrb[27].mxu1 }
 0x135   : > { %v1710_v53 = vadd.f32 %v1709_v41, %v1708_v42  ;;  %v1766_v24 = vadd.f32 %v1765_v12, %v1764_v48  ;;  %v1139_v25 = vadd.f32 %v1763_v33, %v1034_v40 }
 0x137   : > { %v1039_v50 = vadd.f32 %v1710_v53, %v934_v55  ;;  %v1711_v31 = vpop.f32.mrb[28].mxu0  ;;  %v1767_v47 = vpop.f32.mrb[28].mxu1 }
 0x138   : > { %v1712_v27 = vpop.f32.mrb[29].mxu0  ;;  %v1768_v57 = vpop.f32.mrb[29].mxu1 }
 0x139   : > { %v1713_v9 = vadd.f32 %v1712_v27, %v1711_v31  ;;  %v1769_v45 = vadd.f32 %v1768_v57, %v1767_v47  ;;  %v1144_v10 = vadd.f32 %v1766_v24, %v1039_v50 }
 0x13b   : > { %v1044_v49 = vadd.f32 %v1713_v9, %v939_v20  ;;  %v1714_v58 = vpop.f32.mrb[30].mxu0  ;;  %v1770_v14 = vpop.f32.mrb[30].mxu1 }
 0x13c   : > { %v1715_v44 = vpop.f32.mrb[31].mxu0  ;;  %v1771_v15 = vpop.f32.mrb[31].mxu1 }
 0x13d   : > { %v1716_v59 = vadd.f32 %v1715_v44, %v1714_v58  ;;  %v1772_v3 = vadd.f32 %v1771_v15, %v1770_v14  ;;  %v1149_v60 = vadd.f32 %v1769_v45, %v1044_v49 }
 0x13f   : > { %v1049_v34 = vadd.f32 %v1716_v59, %v2979_v56  ;;  %v1831_v55 = vpop.f32.mrb[32].mxu0  ;;  %v1837_v20 = vpop.f32.mrb[32].mxu1 }
 0x140   : > { %v1229_v61 = vadd.f32 %v1831_v55, %v1124_v5  ;;  %v1249_v35 = vadd.f32 %v1837_v20, %v1144_v10  ;;  %v1223_v62 = vpop.f32.mrb[33].mxu0  ;;  %v1243_v18 = vpop.f32.mrb[33].mxu1 }
 0x141   : > { %v1224_v63 = vadd.f32 %v1223_v62, %v1119_v52  ;;  %v1244_v37 = vadd.f32 %v1243_v18, %v1139_v25  ;;  %v1154_v36 = vadd.f32 %v1772_v3, %v1049_v34 }
 0x142   : > { %1263 = vst [vmem:[%s2987_s26 + $0x8] sm:$0xff] %v1229_v61  ;;  %v1285_v56 = vmul.f32 %v1229_v61, %v1229_v61  ;;  %1267 = vst [vmem:[%s2987_s26 + $0x28] sm:$0xff] %v1249_v35  ;;  %v1289_v16 = vmul.f32 %v1249_v35, %v1249_v35 }
 0x143   : > { %1262 = vst [vmem:[%s2987_s26] sm:$0xff] %v1224_v63  ;;  %v1270_v51 = vadd.f32 %v1229_v61, %v1224_v63  ;;  %v1284_v8 = vmul.f32 %v1224_v63, %v1224_v63  ;;  %1266 = vst [vmem:[%s2987_s26 + $0x20] sm:$0xff] %v1244_v37  ;;  %v1834_v46 = vpop.f32.mrb[34].mxu0  ;;  %v1840_v38 = vpop.f32.mrb[34].mxu1  ;;  %v1288_v21 = vmul.f32 %v1244_v37, %v1244_v37 }
 0x144   : > { %v1239_v0 = vadd.f32 %v1834_v46, %v1134_v39  ;;  %v1259_v19 = vadd.f32 %v1840_v38, %v1154_v36  ;;  %v1233_v1 = vpop.f32.mrb[35].mxu0  ;;  %v1253_v30 = vpop.f32.mrb[35].mxu1 }
 0x145   : > { %v1292_v52 = vadd.f32 %v1285_v56, %v1284_v8  ;;  %v1234_v7 = vadd.f32 %v1233_v1, %v1129_v17  ;;  %v1254_v2 = vadd.f32 %v1253_v30, %v1149_v60 }
 0x146   : > { %1265 = vst [vmem:[%s2987_s26 + $0x18] sm:$0xff] %v1239_v0  ;;  %1269 = vst [vmem:[%s2987_s26 + $0x38] sm:$0xff] %v1259_v19  ;;  %v1287_v6 = vmul.f32 %v1239_v0, %v1239_v0  ;;  %v1291_v4 = vmul.f32 %v1259_v19, %v1259_v19 }
 0x147   : > { %1264 = vst [vmem:[%s2987_s26 + $0x10] sm:$0xff] %v1234_v7  ;;  %v1271_v29 = vadd.f32 %v1270_v51, %v1234_v7  ;;  %v1286_v5 = vmul.f32 %v1234_v7, %v1234_v7  ;;  %1268 = vst [vmem:[%s2987_s26 + $0x30] sm:$0xff] %v1254_v2  ;;  %v1290_v28 = vmul.f32 %v1254_v2, %v1254_v2 }
 0x149   : > { %v1272_v54 = vadd.f32 %v1271_v29, %v1239_v0  ;;  %v1293_v11 = vadd.f32 %v1292_v52, %v1286_v5 }
 0x14b   : > { %v1294_v43 = vadd.f32 %v1293_v11, %v1287_v6  ;;  %v1273_v13 = vadd.f32 %v1272_v54, %v1244_v37 }
 0x14d   : > { %v1274_v22 = vadd.f32 %v1273_v13, %v1249_v35  ;;  %v1295_v23 = vadd.f32 %v1294_v43, %v1288_v21 }
 0x14f   : > { %v1275_v26 = vadd.f32 %v1274_v22, %v1254_v2  ;;  %v1296_v17 = vadd.f32 %v1295_v23, %v1289_v16 }
 0x151   : > { %v1276_v32 = vadd.f32 %v1275_v26, %v1259_v19  ;;  %v1297_v33 = vadd.f32 %v1296_v17, %v1290_v28 }
 0x153   : > { %v1277_v39 = vrot.slane %v1276_v32, 4  ;;  %v1298_v40 = vadd.f32 %v1297_v33, %v1291_v4 }
 0x155   : > { %v1278_v42 = vadd.f32 %v1277_v39, %v1276_v32  ;;  %v1299_v48 = vrot.slane %v1298_v40, 4 }
 0x157   : > { %v1279_v41 = vrot.slane %v1278_v42, 2  ;;  %v1300_v12 = vadd.f32 %v1299_v48, %v1298_v40 }
 0x159   : > { %v1280_v53 = vadd.f32 %v1279_v41, %v1278_v42  ;;  %v1301_v24 = vrot.slane %v1300_v12, 2 }
 0x15b   : > { %v1281_v25 = vrot.slane %v1280_v53, 1  ;;  %v1302_v50 = vadd.f32 %v1301_v24, %v1300_v12 }
 0x15d   : > { %v1282_v31 = vadd.f32 %v1281_v25, %v1280_v53  ;;  %v1303_v47 = vrot.slane %v1302_v50, 1 }
 0x15f   : > { %1283 = vst [vmem:[%s397_s11] sm:$0x1] %v1282_v31  ;;  %v1304_v27 = vadd.f32 %v1303_v47, %v1302_v50 }
 0x161   : > { %1305 = vst [vmem:[%s403_s15] sm:$0x1] %v1304_v27 }
 0x162 PF: > { %s19_s29 = sadd.s32 1, %s2064_s29   ;;  %s3025_s27 = smov %s2060_s28 }
 0x163   : > { %p16_p5 = scmp.ge.s32.totalorder %s19_s29, 4   ;;  %s3026_s28 = smov %s3028_s30 }
 0x165   :  { %18 = sbr.rel (!%p16_p5) target bundleno = 2 (0x2), region = 107 }

</bundles_post_ra>
